<compile_context>
chip_gen: v7x
topology: tpu7x:2x2x1
jax: 0.10.0
libtpu: 0.0.40
codegen_flags: <defaults>
</compile_context>

<pallas_src>
import jax
import jax.numpy as jnp
from jax.experimental import pallas as pl
from jax.experimental.pallas import tpu as pltpu


# ----------------------------------------------------------------------------
# Fused Pallas kernel: context linear + gate precompute + T-step LSTM rollout
# ----------------------------------------------------------------------------
def lstm_fused_kernel(emb_ref, x_ref, wctx_ref, bctx_ref,
                      w01_ref, wrest_ref, wctxrows_ref, bg_ref,
                      whhc_ref, bheads_ref, ind_out_ref, pay_out_ref):
    B, T = ind_out_ref.shape
    H = whhc_ref.shape[0]
    H4 = 4 * H

    def sigmoid_t(x):
        # sigmoid via a single EUP tanh pass (exact identity)
        return 0.5 * (1.0 + jnp.tanh(0.5 * x))

    # ---- one-time setup, outside the recurrent critical path ---------------
    # hidden_linear (context projection), f32 MXU: off-chain, accuracy > speed.
    ctx = (jnp.dot(emb_ref[...], wctx_ref[...],
                   preferred_element_type=jnp.float32) + bctx_ref[...])
    # per-batch gate bias: ctx @ W_ih[ctx rows] + b_gate  (folds away the
    # T-fold context duplication entirely)
    ctx_gate = (jnp.dot(ctx, wctxrows_ref[...],
                        preferred_element_type=jnp.float32) + bg_ref[...])   # [B,4H]

    x_all = x_ref[...]                                    # [T*B, D_seq] (t-major)
    w0 = w01_ref[0:1, :]                                  # [1, 4H]
    w1 = w01_ref[1:2, :]                                  # [1, 4H]

    # NaN mask for column 0 over all T*B rows; teacher forcing applies only to
    # rows with t > 0 (rows >= B).  Zero the NaN contributions in the hoisted
    # precompute; the prev-prediction replacement is added inside the loop.
    nan_all = jnp.isnan(x_all[:, 0:1])                    # [T*B, 1]
    row = jax.lax.broadcasted_iota(jnp.int32, (T * B, 1), 0)
    force = nan_all & (row >= B)
    x0c = jnp.where(force, 0.0, x_all[:, 0:1])
    x1c = jnp.where(force, 0.0, x_all[:, 1:2])

    # Data-independent gate pre-activation: pure VPU rank-1 updates (K is tiny,
    # no MXU pass wasted), plus the per-batch context/bias term tiled over T.
    pre = x0c * w0 + x1c * w1
    for j in range(wrest_ref.shape[0]):
        pre = pre + x_all[:, 2 + j:3 + j] * wrest_ref[j:j + 1, :]
    pre = pre + jnp.concatenate([ctx_gate] * T, axis=0)   # [T*B, 4H]

    # hoisted masks (broadcast_in_dim is not CSE'd)
    lane = jax.lax.broadcasted_iota(jnp.int32, (B, H4), 1)
    g_mask = (lane >= 2 * H) & (lane < 3 * H)             # tanh range (g gate)

    whhc = whhc_ref[...]                                  # [H, 4H+2] bf16
    bheads = bheads_ref[...]                              # [1, 2] (ind, pay)

    h = jnp.zeros((B, H), jnp.float32)
    c = jnp.zeros((B, H), jnp.float32)
    inds, pays = [], []

    # ---- fully-unrolled recurrence (T is small & static) --------------------
    for t in range(T):
        if t == 0:
            # h == 0: recurrent matmul contributes nothing, skip it.
            gates = pre[0:B, :]
        else:
            # single dependent MXU matmul: recurrent gates + previous heads
            fused = jnp.dot(h.astype(jnp.bfloat16), whhc,
                            preferred_element_type=jnp.float32)   # [B, 4H+2]
            heads = fused[:, H4:H4 + 2] + bheads
            prev_ind = sigmoid_t(heads[:, 0:1])           # Ind_pay_{t-1}
            prev_pay = heads[:, 1:2]                      # pay_{t-1}
            inds.append(prev_ind)
            pays.append(prev_pay)

            # eval-mode teacher forcing on missing (NaN) observations
            nm = nan_all[t * B:(t + 1) * B, :]
            corr = (jnp.where(nm, prev_ind, 0.0) * w0
                    + jnp.where(nm, prev_ind * prev_pay, 0.0) * w1)
            gates = pre[t * B:(t + 1) * B, :] + fused[:, 0:H4] + corr

        # single-tanh activation over the full [B, 4H] vreg
        tt = jnp.tanh(jnp.where(g_mask, gates, 0.5 * gates))
        act = jnp.where(g_mask, tt, 0.5 * (1.0 + tt))
        i_g = act[:, 0:H]
        f_g = act[:, H:2 * H]
        g_g = act[:, 2 * H:3 * H]
        o_g = act[:, 3 * H:H4]

        c = f_g * c + i_g * g_g
        h = o_g * jnp.tanh(c)

    # trailing heads for the last step (only one small extra dot)
    heads = (jnp.dot(h.astype(jnp.bfloat16), whhc[:, H4:H4 + 2],
                     preferred_element_type=jnp.float32) + bheads)
    inds.append(sigmoid_t(heads[:, 0:1]))
    pays.append(heads[:, 1:2])

    # single-shot writeback, no per-step masked stores, no wrapper transposes
    ind_out_ref[...] = jnp.concatenate(inds, axis=1)      # [B, T]
    pay_out_ref[...] = jnp.concatenate(pays, axis=1)      # [B, T]


# ----------------------------------------------------------------------------
# Wrapper
# ----------------------------------------------------------------------------
def lstm_model_forward(X_info, x_lob, x_cc, x_inj, X_seq, p):
    """Eval-mode forward of LSTM_Model. Returns (Ind_pay_pred, pay_pred), each [B, T]."""
    # Embedding gathers + concat (glue, plain JAX).
    emb = jnp.concatenate(
        [X_info, p["E_lob"][x_lob], p["E_cc"][x_cc], p["E_inj"][x_inj]], axis=1)

    B, T, D_seq = X_seq.shape
    # time-major, flattened over (T, B): row t*B + b == X_seq[b, t, :]
    x_flat = jnp.transpose(X_seq, (1, 0, 2)).reshape(T * B, D_seq)

    w_ih = p["W_ih"]                       # [D_seq + E_ctx, 4H], gate order i,f,g,o
    w01 = w_ih[0:2, :]                     # rows 0/1: teacher-forced columns
    w_rest = w_ih[2:D_seq, :]              # remaining raw sequence features
    w_ctx_rows = w_ih[D_seq:, :]           # context-feature rows

    # fused recurrent weight: [W_hh | W_ind | W_pay] -> [H, 4H+2], bf16 operand
    whh_cat = jnp.concatenate(
        [p["W_hh"], p["W_ind"], p["W_pay"]], axis=1).astype(jnp.bfloat16)
    b_heads = jnp.concatenate([p["b_ind"], p["b_pay"]], axis=1)   # [1, 2]

    vmem = pl.BlockSpec(memory_space=pltpu.MemorySpace.VMEM)
    ind_out, pay_out = pl.pallas_call(
        lstm_fused_kernel,
        out_shape=(jax.ShapeDtypeStruct((B, T), jnp.float32),
                   jax.ShapeDtypeStruct((B, T), jnp.float32)),
        in_specs=[vmem] * 10,
        out_specs=(vmem, vmem),
        # explicit scoped-VMEM budget (well below every generation's physical
        # VMEM; this kernel uses only a few hundred KiB at these shapes)
        compiler_params=pltpu.CompilerParams(vmem_limit_bytes=32 * 1024 * 1024),
    )(emb, x_flat, p["W_ctx"], p["b_ctx"].reshape(1, -1),
      w01, w_rest, w_ctx_rows, p["b_g"].reshape(1, -1),
      whh_cat, b_heads)

    return ind_out, pay_out                  # each [B, T]


# ----------------------------------------------------------------------------
# Pure-JAX reference (mirrors the PyTorch forward, eval mode)
# ----------------------------------------------------------------------------
def reference_forward(X_info, x_lob, x_cc, x_inj, X_seq, p):
    emb = jnp.concatenate(
        [X_info, p["E_lob"][x_lob], p["E_cc"][x_cc], p["E_inj"][x_inj]], axis=1)
    ctx = emb @ p["W_ctx"] + p["b_ctx"]
    B, T, _ = X_seq.shape
    seq = jnp.concatenate(
        [X_seq, jnp.broadcast_to(ctx[:, None, :], (B, T, ctx.shape[1]))], axis=2)
    H = p["W_hh"].shape[0]
    h = jnp.zeros((B, H), jnp.float32)
    c = jnp.zeros((B, H), jnp.float32)
    prev_ind = jnp.zeros((B, 1), jnp.float32)
    prev_pay = jnp.zeros((B, 1), jnp.float32)
    inds, pays = [], []
    for t in range(T):
        x = seq[:, t]
        if t > 0:
            m = jnp.isnan(x[:, 0:1])
            x = x.at[:, 0:1].set(jnp.where(m, prev_ind, x[:, 0:1]))
            x = x.at[:, 1:2].set(jnp.where(m, prev_ind * prev_pay, x[:, 1:2]))
        gates = x @ p["W_ih"] + h @ p["W_hh"] + p["b_g"]
        i_g = jax.nn.sigmoid(gates[:, 0:H])
        f_g = jax.nn.sigmoid(gates[:, H:2 * H])
        g_g = jnp.tanh(gates[:, 2 * H:3 * H])
        o_g = jax.nn.sigmoid(gates[:, 3 * H:4 * H])
        c = f_g * c + i_g * g_g
        h = o_g * jnp.tanh(c)
        pay = h @ p["W_pay"] + p["b_pay"]
        ind = jax.nn.sigmoid(h @ p["W_ind"] + p["b_ind"])
        prev_ind, prev_pay = ind, pay
        inds.append(ind[:, 0])
        pays.append(pay[:, 0])
    return jnp.stack(inds, axis=1), jnp.stack(pays, axis=1)


# ----------------------------------------------------------------------------
if __name__ == "__main__":
    key = jax.random.PRNGKey(0)

    # Synthetic "config_parameters.ini" values.
    B, T = 8, 8
    size_lob, size_cc, size_inj = 10, 12, 15
    e_lob, e_cc, e_inj = 4, 4, 8
    E_ctx, H = 16, 32
    D_info, D_seq = 3, 4
    sum_embed = e_lob + e_cc + e_inj
    D_ctx_in = D_info + sum_embed
    D_in = D_seq + E_ctx

    ks = jax.random.split(key, 16)

    # Deterministic synthetic parameters (not a checkpoint load).
    params = {
        "E_lob": 0.1 * jax.random.normal(ks[0], (size_lob, e_lob), jnp.float32),
        "E_cc":  0.1 * jax.random.normal(ks[1], (size_cc, e_cc), jnp.float32),
        "E_inj": 0.1 * jax.random.normal(ks[2], (size_inj, e_inj), jnp.float32),
        "W_ctx": 0.1 * jax.random.normal(ks[3], (D_ctx_in, E_ctx), jnp.float32),
        "b_ctx": 0.1 * jax.random.normal(ks[4], (E_ctx,), jnp.float32),
        "W_ih":  0.1 * jax.random.normal(ks[5], (D_in, 4 * H), jnp.float32),
        "W_hh":  0.1 * jax.random.normal(ks[6], (H, 4 * H), jnp.float32),
        "b_g":   (0.1 * jax.random.normal(ks[7], (4 * H,), jnp.float32)
                  + 0.1 * jax.random.normal(ks[8], (4 * H,), jnp.float32)
                  ).reshape(1, 4 * H),
        "W_pay": 0.1 * jax.random.normal(ks[9], (H, 1), jnp.float32),
        "b_pay": 0.1 * jax.random.normal(ks[10], (1, 1), jnp.float32),
        "W_ind": 0.1 * jax.random.normal(ks[11], (H, 1), jnp.float32),
        "b_ind": 0.1 * jax.random.normal(ks[12], (1, 1), jnp.float32),
    }

    # Inputs.
    X_info = jax.random.normal(ks[13], (B, D_info), jnp.float32)
    x_lob = jax.random.randint(ks[14], (B,), 0, size_lob, jnp.int32)
    x_cc = jax.random.randint(ks[14], (B,), 0, size_cc, jnp.int32)
    x_inj = jax.random.randint(ks[14], (B,), 0, size_inj, jnp.int32)
    X_seq = jax.random.normal(ks[15], (B, T, D_seq), jnp.float32)
    # Missing observations (NaN in column 0 at timesteps > 0) exercise the
    # autoregressive replacement branch.
    X_seq = X_seq.at[jnp.array([1, 3, 5]), jnp.array([2, 4, 6]), 0].set(jnp.nan)

    ind_pred, pay_pred = jax.block_until_ready(
        lstm_model_forward(X_info, x_lob, x_cc, x_inj, X_seq, params))

    ind_ref, pay_ref = reference_forward(X_info, x_lob, x_cc, x_inj, X_seq, params)

    assert ind_pred.shape == (B, T) and pay_pred.shape == (B, T)
    # Tolerance relaxed from 2e-3 to 5e-3: the recurrent matmul now uses bf16
    # MXU operands (per review) with f32 accumulation; observed error is well
    # inside this bound at T=8.
    assert jnp.allclose(ind_pred, ind_ref, rtol=5e-3, atol=5e-3)
    assert jnp.allclose(pay_pred, pay_ref, rtol=5e-3, atol=5e-3)

    print("KERNEL_OK")
</pallas_src>

<mosaic_0001>
module attributes {stable_mosaic.version = 11 : i64} {
  func.func @lstm_fused_kernel(%arg0: memref<8x19xf32, #tpu.memory_space<vmem>>, %arg1: memref<64x4xf32, #tpu.memory_space<vmem>>, %arg2: memref<19x16xf32, #tpu.memory_space<vmem>>, %arg3: memref<1x16xf32, #tpu.memory_space<vmem>>, %arg4: memref<2x128xf32, #tpu.memory_space<vmem>>, %arg5: memref<2x128xf32, #tpu.memory_space<vmem>>, %arg6: memref<16x128xf32, #tpu.memory_space<vmem>>, %arg7: memref<1x128xf32, #tpu.memory_space<vmem>>, %arg8: memref<32x130xbf16, #tpu.memory_space<vmem>>, %arg9: memref<1x2xf32, #tpu.memory_space<vmem>>, %arg10: memref<8x8xf32, #tpu.memory_space<vmem>>, %arg11: memref<8x8xf32, #tpu.memory_space<vmem>>) attributes {dimension_semantics = [], scalar_prefetch = 0 : i64, scratch_operands = 0 : i64, tpu.core_type = #tpu.core_type<tc>} {
    %c0 = arith.constant 0 : index
    %c0_0 = arith.constant 0 : index
    %0 = vector.load %arg0[%c0, %c0_0] : memref<8x19xf32, #tpu.memory_space<vmem>>, vector<8x19xf32>
    %c0_1 = arith.constant 0 : index
    %c0_2 = arith.constant 0 : index
    %1 = vector.load %arg2[%c0_1, %c0_2] : memref<19x16xf32, #tpu.memory_space<vmem>>, vector<19x16xf32>
    %cst = arith.constant dense<0.000000e+00> : vector<8x16xf32>
    %2 = tpu.matmul %0, %1, %cst {dimension_numbers = #tpu.dot_dimension_numbers<[1], [0], [0], [1], [0, 0, 1, 1], [], []>} : vector<8x19xf32>, vector<19x16xf32>, vector<8x16xf32> -> vector<8x16xf32>
    %c0_3 = arith.constant 0 : index
    %c0_4 = arith.constant 0 : index
    %3 = vector.load %arg3[%c0_3, %c0_4] : memref<1x16xf32, #tpu.memory_space<vmem>>, vector<1x16xf32>
    %4 = vector.broadcast %3 : vector<1x16xf32> to vector<8x16xf32>
    %5 = arith.addf %2, %4 : vector<8x16xf32>
    %c0_5 = arith.constant 0 : index
    %c0_6 = arith.constant 0 : index
    %6 = vector.load %arg6[%c0_5, %c0_6] : memref<16x128xf32, #tpu.memory_space<vmem>>, vector<16x128xf32>
    %cst_7 = arith.constant dense<0.000000e+00> : vector<8x128xf32>
    %7 = tpu.matmul %5, %6, %cst_7 {dimension_numbers = #tpu.dot_dimension_numbers<[1], [0], [0], [1], [0, 0, 1, 1], [], []>} : vector<8x16xf32>, vector<16x128xf32>, vector<8x128xf32> -> vector<8x128xf32>
    %c0_8 = arith.constant 0 : index
    %c0_9 = arith.constant 0 : index
    %8 = vector.load %arg7[%c0_8, %c0_9] : memref<1x128xf32, #tpu.memory_space<vmem>>, vector<1x128xf32>
    %9 = vector.broadcast %8 : vector<1x128xf32> to vector<8x128xf32>
    %10 = arith.addf %7, %9 : vector<8x128xf32>
    %c0_10 = arith.constant 0 : index
    %c0_11 = arith.constant 0 : index
    %11 = vector.load %arg1[%c0_10, %c0_11] : memref<64x4xf32, #tpu.memory_space<vmem>>, vector<64x4xf32>
    %c0_12 = arith.constant 0 : index
    %c0_13 = arith.constant 0 : index
    %12 = vector.load %arg4[%c0_12, %c0_13] : memref<2x128xf32, #tpu.memory_space<vmem>>, vector<1x128xf32>
    %c1 = arith.constant 1 : index
    %c0_14 = arith.constant 0 : index
    %13 = vector.load %arg4[%c1, %c0_14] : memref<2x128xf32, #tpu.memory_space<vmem>>, vector<1x128xf32>
    %14 = vector.extract_strided_slice %11 {offsets = [0, 0], sizes = [64, 1], strides = [1, 1]} : vector<64x4xf32> to vector<64x1xf32>
    %15 = arith.cmpf one, %14, %14 : vector<64x1xf32>
    %16 = tpu.iota {dimensions = array<i32: 0>} : vector<64x1xi32>
    %c8_i32 = arith.constant 8 : i32
    %17 = vector.broadcast %c8_i32 : i32 to vector<64x1xi32>
    %18 = arith.cmpi sge, %16, %17 : vector<64x1xi32>
    %19 = arith.andi %15, %18 : vector<64x1xi1>
    %20 = vector.extract_strided_slice %11 {offsets = [0, 0], sizes = [64, 1], strides = [1, 1]} : vector<64x4xf32> to vector<64x1xf32>
    %cst_15 = arith.constant 0.000000e+00 : f32
    %21 = vector.broadcast %cst_15 : f32 to vector<64x1xf32>
    %22 = arith.select %19, %21, %20 : vector<64x1xi1>, vector<64x1xf32>
    %23 = vector.extract_strided_slice %11 {offsets = [0, 1], sizes = [64, 1], strides = [1, 1]} : vector<64x4xf32> to vector<64x1xf32>
    %cst_16 = arith.constant 0.000000e+00 : f32
    %24 = vector.broadcast %cst_16 : f32 to vector<64x1xf32>
    %25 = arith.select %19, %24, %23 : vector<64x1xi1>, vector<64x1xf32>
    %26 = vector.broadcast %22 : vector<64x1xf32> to vector<64x128xf32>
    %27 = vector.broadcast %12 : vector<1x128xf32> to vector<64x128xf32>
    %28 = arith.mulf %26, %27 : vector<64x128xf32>
    %29 = vector.broadcast %25 : vector<64x1xf32> to vector<64x128xf32>
    %30 = vector.broadcast %13 : vector<1x128xf32> to vector<64x128xf32>
    %31 = arith.mulf %29, %30 : vector<64x128xf32>
    %32 = arith.addf %28, %31 : vector<64x128xf32>
    %33 = vector.extract_strided_slice %11 {offsets = [0, 2], sizes = [64, 1], strides = [1, 1]} : vector<64x4xf32> to vector<64x1xf32>
    %c0_17 = arith.constant 0 : index
    %c0_18 = arith.constant 0 : index
    %34 = vector.load %arg5[%c0_17, %c0_18] : memref<2x128xf32, #tpu.memory_space<vmem>>, vector<1x128xf32>
    %35 = vector.broadcast %33 : vector<64x1xf32> to vector<64x128xf32>
    %36 = vector.broadcast %34 : vector<1x128xf32> to vector<64x128xf32>
    %37 = arith.mulf %35, %36 : vector<64x128xf32>
    %38 = arith.addf %32, %37 : vector<64x128xf32>
    %39 = vector.extract_strided_slice %11 {offsets = [0, 3], sizes = [64, 1], strides = [1, 1]} : vector<64x4xf32> to vector<64x1xf32>
    %c1_19 = arith.constant 1 : index
    %c0_20 = arith.constant 0 : index
    %40 = vector.load %arg5[%c1_19, %c0_20] : memref<2x128xf32, #tpu.memory_space<vmem>>, vector<1x128xf32>
    %41 = vector.broadcast %39 : vector<64x1xf32> to vector<64x128xf32>
    %42 = vector.broadcast %40 : vector<1x128xf32> to vector<64x128xf32>
    %43 = arith.mulf %41, %42 : vector<64x128xf32>
    %44 = arith.addf %38, %43 : vector<64x128xf32>
    %45 = tpu.concatenate %10, %10, %10, %10, %10, %10, %10, %10 in 0 : vector<8x128xf32>, vector<8x128xf32>, vector<8x128xf32>, vector<8x128xf32>, vector<8x128xf32>, vector<8x128xf32>, vector<8x128xf32>, vector<8x128xf32> -> vector<64x128xf32>
    %46 = arith.addf %44, %45 : vector<64x128xf32>
    %47 = tpu.iota {dimensions = array<i32: 1>} : vector<8x128xi32>
    %c64_i32 = arith.constant 64 : i32
    %48 = vector.broadcast %c64_i32 : i32 to vector<8x128xi32>
    %49 = arith.cmpi sge, %47, %48 : vector<8x128xi32>
    %c96_i32 = arith.constant 96 : i32
    %50 = vector.broadcast %c96_i32 : i32 to vector<8x128xi32>
    %51 = arith.cmpi slt, %47, %50 : vector<8x128xi32>
    %52 = arith.andi %49, %51 : vector<8x128xi1>
    %c0_21 = arith.constant 0 : index
    %c0_22 = arith.constant 0 : index
    %53 = vector.load %arg8[%c0_21, %c0_22] : memref<32x130xbf16, #tpu.memory_space<vmem>>, vector<32x130xbf16>
    %c0_23 = arith.constant 0 : index
    %c0_24 = arith.constant 0 : index
    %54 = vector.load %arg9[%c0_23, %c0_24] : memref<1x2xf32, #tpu.memory_space<vmem>>, vector<1x2xf32>
    %cst_25 = arith.constant 0.000000e+00 : f32
    %55 = vector.broadcast %cst_25 : f32 to vector<8x32xf32>
    %56 = vector.extract_strided_slice %46 {offsets = [0, 0], sizes = [8, 128], strides = [1, 1]} : vector<64x128xf32> to vector<8x128xf32>
    %cst_26 = arith.constant 5.000000e-01 : f32
    %57 = vector.broadcast %cst_26 : f32 to vector<8x128xf32>
    %58 = arith.mulf %57, %56 : vector<8x128xf32>
    %59 = arith.select %52, %56, %58 : vector<8x128xi1>, vector<8x128xf32>
    %60 = math.tanh %59 : vector<8x128xf32>
    %cst_27 = arith.constant 1.000000e+00 : f32
    %61 = vector.broadcast %cst_27 : f32 to vector<8x128xf32>
    %62 = arith.addf %61, %60 : vector<8x128xf32>
    %cst_28 = arith.constant 5.000000e-01 : f32
    %63 = vector.broadcast %cst_28 : f32 to vector<8x128xf32>
    %64 = arith.mulf %63, %62 : vector<8x128xf32>
    %65 = arith.select %52, %60, %64 : vector<8x128xi1>, vector<8x128xf32>
    %66 = vector.extract_strided_slice %65 {offsets = [0, 0], sizes = [8, 32], strides = [1, 1]} : vector<8x128xf32> to vector<8x32xf32>
    %67 = vector.extract_strided_slice %65 {offsets = [0, 32], sizes = [8, 32], strides = [1, 1]} : vector<8x128xf32> to vector<8x32xf32>
    %68 = vector.extract_strided_slice %65 {offsets = [0, 64], sizes = [8, 32], strides = [1, 1]} : vector<8x128xf32> to vector<8x32xf32>
    %69 = vector.extract_strided_slice %65 {offsets = [0, 96], sizes = [8, 32], strides = [1, 1]} : vector<8x128xf32> to vector<8x32xf32>
    %70 = arith.mulf %67, %55 : vector<8x32xf32>
    %71 = arith.mulf %66, %68 : vector<8x32xf32>
    %72 = arith.addf %70, %71 : vector<8x32xf32>
    %73 = math.tanh %72 : vector<8x32xf32>
    %74 = arith.mulf %69, %73 : vector<8x32xf32>
    %75 = arith.truncf %74 : vector<8x32xf32> to vector<8x32xbf16>
    %cst_29 = arith.constant dense<0.000000e+00> : vector<8x130xf32>
    %76 = tpu.matmul %75, %53, %cst_29 {dimension_numbers = #tpu.dot_dimension_numbers<[1], [0], [0], [1], [0, 0, 1, 1], [], []>} : vector<8x32xbf16>, vector<32x130xbf16>, vector<8x130xf32> -> vector<8x130xf32>
    %77 = vector.extract_strided_slice %76 {offsets = [0, 128], sizes = [8, 2], strides = [1, 1]} : vector<8x130xf32> to vector<8x2xf32>
    %78 = vector.broadcast %54 : vector<1x2xf32> to vector<8x2xf32>
    %79 = arith.addf %77, %78 : vector<8x2xf32>
    %80 = vector.extract_strided_slice %79 {offsets = [0, 0], sizes = [8, 1], strides = [1, 1]} : vector<8x2xf32> to vector<8x1xf32>
    %cst_30 = arith.constant 5.000000e-01 : f32
    %81 = vector.broadcast %cst_30 : f32 to vector<8x1xf32>
    %82 = arith.mulf %81, %80 : vector<8x1xf32>
    %83 = math.tanh %82 : vector<8x1xf32>
    %cst_31 = arith.constant 1.000000e+00 : f32
    %84 = vector.broadcast %cst_31 : f32 to vector<8x1xf32>
    %85 = arith.addf %84, %83 : vector<8x1xf32>
    %cst_32 = arith.constant 5.000000e-01 : f32
    %86 = vector.broadcast %cst_32 : f32 to vector<8x1xf32>
    %87 = arith.mulf %86, %85 : vector<8x1xf32>
    %88 = vector.extract_strided_slice %79 {offsets = [0, 1], sizes = [8, 1], strides = [1, 1]} : vector<8x2xf32> to vector<8x1xf32>
    %89 = vector.extract_strided_slice %15 {offsets = [8, 0], sizes = [8, 1], strides = [1, 1]} : vector<64x1xi1> to vector<8x1xi1>
    %cst_33 = arith.constant 0.000000e+00 : f32
    %90 = vector.broadcast %cst_33 : f32 to vector<8x1xf32>
    %91 = arith.select %89, %87, %90 : vector<8x1xi1>, vector<8x1xf32>
    %92 = vector.broadcast %91 : vector<8x1xf32> to vector<8x128xf32>
    %93 = vector.broadcast %12 : vector<1x128xf32> to vector<8x128xf32>
    %94 = arith.mulf %92, %93 : vector<8x128xf32>
    %95 = arith.mulf %87, %88 : vector<8x1xf32>
    %cst_34 = arith.constant 0.000000e+00 : f32
    %96 = vector.broadcast %cst_34 : f32 to vector<8x1xf32>
    %97 = arith.select %89, %95, %96 : vector<8x1xi1>, vector<8x1xf32>
    %98 = vector.broadcast %97 : vector<8x1xf32> to vector<8x128xf32>
    %99 = vector.broadcast %13 : vector<1x128xf32> to vector<8x128xf32>
    %100 = arith.mulf %98, %99 : vector<8x128xf32>
    %101 = arith.addf %94, %100 : vector<8x128xf32>
    %102 = vector.extract_strided_slice %46 {offsets = [8, 0], sizes = [8, 128], strides = [1, 1]} : vector<64x128xf32> to vector<8x128xf32>
    %103 = vector.extract_strided_slice %76 {offsets = [0, 0], sizes = [8, 128], strides = [1, 1]} : vector<8x130xf32> to vector<8x128xf32>
    %104 = arith.addf %102, %103 : vector<8x128xf32>
    %105 = arith.addf %104, %101 : vector<8x128xf32>
    %cst_35 = arith.constant 5.000000e-01 : f32
    %106 = vector.broadcast %cst_35 : f32 to vector<8x128xf32>
    %107 = arith.mulf %106, %105 : vector<8x128xf32>
    %108 = arith.select %52, %105, %107 : vector<8x128xi1>, vector<8x128xf32>
    %109 = math.tanh %108 : vector<8x128xf32>
    %cst_36 = arith.constant 1.000000e+00 : f32
    %110 = vector.broadcast %cst_36 : f32 to vector<8x128xf32>
    %111 = arith.addf %110, %109 : vector<8x128xf32>
    %cst_37 = arith.constant 5.000000e-01 : f32
    %112 = vector.broadcast %cst_37 : f32 to vector<8x128xf32>
    %113 = arith.mulf %112, %111 : vector<8x128xf32>
    %114 = arith.select %52, %109, %113 : vector<8x128xi1>, vector<8x128xf32>
    %115 = vector.extract_strided_slice %114 {offsets = [0, 0], sizes = [8, 32], strides = [1, 1]} : vector<8x128xf32> to vector<8x32xf32>
    %116 = vector.extract_strided_slice %114 {offsets = [0, 32], sizes = [8, 32], strides = [1, 1]} : vector<8x128xf32> to vector<8x32xf32>
    %117 = vector.extract_strided_slice %114 {offsets = [0, 64], sizes = [8, 32], strides = [1, 1]} : vector<8x128xf32> to vector<8x32xf32>
    %118 = vector.extract_strided_slice %114 {offsets = [0, 96], sizes = [8, 32], strides = [1, 1]} : vector<8x128xf32> to vector<8x32xf32>
    %119 = arith.mulf %116, %72 : vector<8x32xf32>
    %120 = arith.mulf %115, %117 : vector<8x32xf32>
    %121 = arith.addf %119, %120 : vector<8x32xf32>
    %122 = math.tanh %121 : vector<8x32xf32>
    %123 = arith.mulf %118, %122 : vector<8x32xf32>
    %124 = arith.truncf %123 : vector<8x32xf32> to vector<8x32xbf16>
    %cst_38 = arith.constant dense<0.000000e+00> : vector<8x130xf32>
    %125 = tpu.matmul %124, %53, %cst_38 {dimension_numbers = #tpu.dot_dimension_numbers<[1], [0], [0], [1], [0, 0, 1, 1], [], []>} : vector<8x32xbf16>, vector<32x130xbf16>, vector<8x130xf32> -> vector<8x130xf32>
    %126 = vector.extract_strided_slice %125 {offsets = [0, 128], sizes = [8, 2], strides = [1, 1]} : vector<8x130xf32> to vector<8x2xf32>
    %127 = vector.broadcast %54 : vector<1x2xf32> to vector<8x2xf32>
    %128 = arith.addf %126, %127 : vector<8x2xf32>
    %129 = vector.extract_strided_slice %128 {offsets = [0, 0], sizes = [8, 1], strides = [1, 1]} : vector<8x2xf32> to vector<8x1xf32>
    %cst_39 = arith.constant 5.000000e-01 : f32
    %130 = vector.broadcast %cst_39 : f32 to vector<8x1xf32>
    %131 = arith.mulf %130, %129 : vector<8x1xf32>
    %132 = math.tanh %131 : vector<8x1xf32>
    %cst_40 = arith.constant 1.000000e+00 : f32
    %133 = vector.broadcast %cst_40 : f32 to vector<8x1xf32>
    %134 = arith.addf %133, %132 : vector<8x1xf32>
    %cst_41 = arith.constant 5.000000e-01 : f32
    %135 = vector.broadcast %cst_41 : f32 to vector<8x1xf32>
    %136 = arith.mulf %135, %134 : vector<8x1xf32>
    %137 = vector.extract_strided_slice %128 {offsets = [0, 1], sizes = [8, 1], strides = [1, 1]} : vector<8x2xf32> to vector<8x1xf32>
    %138 = vector.extract_strided_slice %15 {offsets = [16, 0], sizes = [8, 1], strides = [1, 1]} : vector<64x1xi1> to vector<8x1xi1>
    %cst_42 = arith.constant 0.000000e+00 : f32
    %139 = vector.broadcast %cst_42 : f32 to vector<8x1xf32>
    %140 = arith.select %138, %136, %139 : vector<8x1xi1>, vector<8x1xf32>
    %141 = vector.broadcast %140 : vector<8x1xf32> to vector<8x128xf32>
    %142 = vector.broadcast %12 : vector<1x128xf32> to vector<8x128xf32>
    %143 = arith.mulf %141, %142 : vector<8x128xf32>
    %144 = arith.mulf %136, %137 : vector<8x1xf32>
    %cst_43 = arith.constant 0.000000e+00 : f32
    %145 = vector.broadcast %cst_43 : f32 to vector<8x1xf32>
    %146 = arith.select %138, %144, %145 : vector<8x1xi1>, vector<8x1xf32>
    %147 = vector.broadcast %146 : vector<8x1xf32> to vector<8x128xf32>
    %148 = vector.broadcast %13 : vector<1x128xf32> to vector<8x128xf32>
    %149 = arith.mulf %147, %148 : vector<8x128xf32>
    %150 = arith.addf %143, %149 : vector<8x128xf32>
    %151 = vector.extract_strided_slice %46 {offsets = [16, 0], sizes = [8, 128], strides = [1, 1]} : vector<64x128xf32> to vector<8x128xf32>
    %152 = vector.extract_strided_slice %125 {offsets = [0, 0], sizes = [8, 128], strides = [1, 1]} : vector<8x130xf32> to vector<8x128xf32>
    %153 = arith.addf %151, %152 : vector<8x128xf32>
    %154 = arith.addf %153, %150 : vector<8x128xf32>
    %cst_44 = arith.constant 5.000000e-01 : f32
    %155 = vector.broadcast %cst_44 : f32 to vector<8x128xf32>
    %156 = arith.mulf %155, %154 : vector<8x128xf32>
    %157 = arith.select %52, %154, %156 : vector<8x128xi1>, vector<8x128xf32>
    %158 = math.tanh %157 : vector<8x128xf32>
    %cst_45 = arith.constant 1.000000e+00 : f32
    %159 = vector.broadcast %cst_45 : f32 to vector<8x128xf32>
    %160 = arith.addf %159, %158 : vector<8x128xf32>
    %cst_46 = arith.constant 5.000000e-01 : f32
    %161 = vector.broadcast %cst_46 : f32 to vector<8x128xf32>
    %162 = arith.mulf %161, %160 : vector<8x128xf32>
    %163 = arith.select %52, %158, %162 : vector<8x128xi1>, vector<8x128xf32>
    %164 = vector.extract_strided_slice %163 {offsets = [0, 0], sizes = [8, 32], strides = [1, 1]} : vector<8x128xf32> to vector<8x32xf32>
    %165 = vector.extract_strided_slice %163 {offsets = [0, 32], sizes = [8, 32], strides = [1, 1]} : vector<8x128xf32> to vector<8x32xf32>
    %166 = vector.extract_strided_slice %163 {offsets = [0, 64], sizes = [8, 32], strides = [1, 1]} : vector<8x128xf32> to vector<8x32xf32>
    %167 = vector.extract_strided_slice %163 {offsets = [0, 96], sizes = [8, 32], strides = [1, 1]} : vector<8x128xf32> to vector<8x32xf32>
    %168 = arith.mulf %165, %121 : vector<8x32xf32>
    %169 = arith.mulf %164, %166 : vector<8x32xf32>
    %170 = arith.addf %168, %169 : vector<8x32xf32>
    %171 = math.tanh %170 : vector<8x32xf32>
    %172 = arith.mulf %167, %171 : vector<8x32xf32>
    %173 = arith.truncf %172 : vector<8x32xf32> to vector<8x32xbf16>
    %cst_47 = arith.constant dense<0.000000e+00> : vector<8x130xf32>
    %174 = tpu.matmul %173, %53, %cst_47 {dimension_numbers = #tpu.dot_dimension_numbers<[1], [0], [0], [1], [0, 0, 1, 1], [], []>} : vector<8x32xbf16>, vector<32x130xbf16>, vector<8x130xf32> -> vector<8x130xf32>
    %175 = vector.extract_strided_slice %174 {offsets = [0, 128], sizes = [8, 2], strides = [1, 1]} : vector<8x130xf32> to vector<8x2xf32>
    %176 = vector.broadcast %54 : vector<1x2xf32> to vector<8x2xf32>
    %177 = arith.addf %175, %176 : vector<8x2xf32>
    %178 = vector.extract_strided_slice %177 {offsets = [0, 0], sizes = [8, 1], strides = [1, 1]} : vector<8x2xf32> to vector<8x1xf32>
    %cst_48 = arith.constant 5.000000e-01 : f32
    %179 = vector.broadcast %cst_48 : f32 to vector<8x1xf32>
    %180 = arith.mulf %179, %178 : vector<8x1xf32>
    %181 = math.tanh %180 : vector<8x1xf32>
    %cst_49 = arith.constant 1.000000e+00 : f32
    %182 = vector.broadcast %cst_49 : f32 to vector<8x1xf32>
    %183 = arith.addf %182, %181 : vector<8x1xf32>
    %cst_50 = arith.constant 5.000000e-01 : f32
    %184 = vector.broadcast %cst_50 : f32 to vector<8x1xf32>
    %185 = arith.mulf %184, %183 : vector<8x1xf32>
    %186 = vector.extract_strided_slice %177 {offsets = [0, 1], sizes = [8, 1], strides = [1, 1]} : vector<8x2xf32> to vector<8x1xf32>
    %187 = vector.extract_strided_slice %15 {offsets = [24, 0], sizes = [8, 1], strides = [1, 1]} : vector<64x1xi1> to vector<8x1xi1>
    %cst_51 = arith.constant 0.000000e+00 : f32
    %188 = vector.broadcast %cst_51 : f32 to vector<8x1xf32>
    %189 = arith.select %187, %185, %188 : vector<8x1xi1>, vector<8x1xf32>
    %190 = vector.broadcast %189 : vector<8x1xf32> to vector<8x128xf32>
    %191 = vector.broadcast %12 : vector<1x128xf32> to vector<8x128xf32>
    %192 = arith.mulf %190, %191 : vector<8x128xf32>
    %193 = arith.mulf %185, %186 : vector<8x1xf32>
    %cst_52 = arith.constant 0.000000e+00 : f32
    %194 = vector.broadcast %cst_52 : f32 to vector<8x1xf32>
    %195 = arith.select %187, %193, %194 : vector<8x1xi1>, vector<8x1xf32>
    %196 = vector.broadcast %195 : vector<8x1xf32> to vector<8x128xf32>
    %197 = vector.broadcast %13 : vector<1x128xf32> to vector<8x128xf32>
    %198 = arith.mulf %196, %197 : vector<8x128xf32>
    %199 = arith.addf %192, %198 : vector<8x128xf32>
    %200 = vector.extract_strided_slice %46 {offsets = [24, 0], sizes = [8, 128], strides = [1, 1]} : vector<64x128xf32> to vector<8x128xf32>
    %201 = vector.extract_strided_slice %174 {offsets = [0, 0], sizes = [8, 128], strides = [1, 1]} : vector<8x130xf32> to vector<8x128xf32>
    %202 = arith.addf %200, %201 : vector<8x128xf32>
    %203 = arith.addf %202, %199 : vector<8x128xf32>
    %cst_53 = arith.constant 5.000000e-01 : f32
    %204 = vector.broadcast %cst_53 : f32 to vector<8x128xf32>
    %205 = arith.mulf %204, %203 : vector<8x128xf32>
    %206 = arith.select %52, %203, %205 : vector<8x128xi1>, vector<8x128xf32>
    %207 = math.tanh %206 : vector<8x128xf32>
    %cst_54 = arith.constant 1.000000e+00 : f32
    %208 = vector.broadcast %cst_54 : f32 to vector<8x128xf32>
    %209 = arith.addf %208, %207 : vector<8x128xf32>
    %cst_55 = arith.constant 5.000000e-01 : f32
    %210 = vector.broadcast %cst_55 : f32 to vector<8x128xf32>
    %211 = arith.mulf %210, %209 : vector<8x128xf32>
    %212 = arith.select %52, %207, %211 : vector<8x128xi1>, vector<8x128xf32>
    %213 = vector.extract_strided_slice %212 {offsets = [0, 0], sizes = [8, 32], strides = [1, 1]} : vector<8x128xf32> to vector<8x32xf32>
    %214 = vector.extract_strided_slice %212 {offsets = [0, 32], sizes = [8, 32], strides = [1, 1]} : vector<8x128xf32> to vector<8x32xf32>
    %215 = vector.extract_strided_slice %212 {offsets = [0, 64], sizes = [8, 32], strides = [1, 1]} : vector<8x128xf32> to vector<8x32xf32>
    %216 = vector.extract_strided_slice %212 {offsets = [0, 96], sizes = [8, 32], strides = [1, 1]} : vector<8x128xf32> to vector<8x32xf32>
    %217 = arith.mulf %214, %170 : vector<8x32xf32>
    %218 = arith.mulf %213, %215 : vector<8x32xf32>
    %219 = arith.addf %217, %218 : vector<8x32xf32>
    %220 = math.tanh %219 : vector<8x32xf32>
    %221 = arith.mulf %216, %220 : vector<8x32xf32>
    %222 = arith.truncf %221 : vector<8x32xf32> to vector<8x32xbf16>
    %cst_56 = arith.constant dense<0.000000e+00> : vector<8x130xf32>
    %223 = tpu.matmul %222, %53, %cst_56 {dimension_numbers = #tpu.dot_dimension_numbers<[1], [0], [0], [1], [0, 0, 1, 1], [], []>} : vector<8x32xbf16>, vector<32x130xbf16>, vector<8x130xf32> -> vector<8x130xf32>
    %224 = vector.extract_strided_slice %223 {offsets = [0, 128], sizes = [8, 2], strides = [1, 1]} : vector<8x130xf32> to vector<8x2xf32>
    %225 = vector.broadcast %54 : vector<1x2xf32> to vector<8x2xf32>
    %226 = arith.addf %224, %225 : vector<8x2xf32>
    %227 = vector.extract_strided_slice %226 {offsets = [0, 0], sizes = [8, 1], strides = [1, 1]} : vector<8x2xf32> to vector<8x1xf32>
    %cst_57 = arith.constant 5.000000e-01 : f32
    %228 = vector.broadcast %cst_57 : f32 to vector<8x1xf32>
    %229 = arith.mulf %228, %227 : vector<8x1xf32>
    %230 = math.tanh %229 : vector<8x1xf32>
    %cst_58 = arith.constant 1.000000e+00 : f32
    %231 = vector.broadcast %cst_58 : f32 to vector<8x1xf32>
    %232 = arith.addf %231, %230 : vector<8x1xf32>
    %cst_59 = arith.constant 5.000000e-01 : f32
    %233 = vector.broadcast %cst_59 : f32 to vector<8x1xf32>
    %234 = arith.mulf %233, %232 : vector<8x1xf32>
    %235 = vector.extract_strided_slice %226 {offsets = [0, 1], sizes = [8, 1], strides = [1, 1]} : vector<8x2xf32> to vector<8x1xf32>
    %236 = vector.extract_strided_slice %15 {offsets = [32, 0], sizes = [8, 1], strides = [1, 1]} : vector<64x1xi1> to vector<8x1xi1>
    %cst_60 = arith.constant 0.000000e+00 : f32
    %237 = vector.broadcast %cst_60 : f32 to vector<8x1xf32>
    %238 = arith.select %236, %234, %237 : vector<8x1xi1>, vector<8x1xf32>
    %239 = vector.broadcast %238 : vector<8x1xf32> to vector<8x128xf32>
    %240 = vector.broadcast %12 : vector<1x128xf32> to vector<8x128xf32>
    %241 = arith.mulf %239, %240 : vector<8x128xf32>
    %242 = arith.mulf %234, %235 : vector<8x1xf32>
    %cst_61 = arith.constant 0.000000e+00 : f32
    %243 = vector.broadcast %cst_61 : f32 to vector<8x1xf32>
    %244 = arith.select %236, %242, %243 : vector<8x1xi1>, vector<8x1xf32>
    %245 = vector.broadcast %244 : vector<8x1xf32> to vector<8x128xf32>
    %246 = vector.broadcast %13 : vector<1x128xf32> to vector<8x128xf32>
    %247 = arith.mulf %245, %246 : vector<8x128xf32>
    %248 = arith.addf %241, %247 : vector<8x128xf32>
    %249 = vector.extract_strided_slice %46 {offsets = [32, 0], sizes = [8, 128], strides = [1, 1]} : vector<64x128xf32> to vector<8x128xf32>
    %250 = vector.extract_strided_slice %223 {offsets = [0, 0], sizes = [8, 128], strides = [1, 1]} : vector<8x130xf32> to vector<8x128xf32>
    %251 = arith.addf %249, %250 : vector<8x128xf32>
    %252 = arith.addf %251, %248 : vector<8x128xf32>
    %cst_62 = arith.constant 5.000000e-01 : f32
    %253 = vector.broadcast %cst_62 : f32 to vector<8x128xf32>
    %254 = arith.mulf %253, %252 : vector<8x128xf32>
    %255 = arith.select %52, %252, %254 : vector<8x128xi1>, vector<8x128xf32>
    %256 = math.tanh %255 : vector<8x128xf32>
    %cst_63 = arith.constant 1.000000e+00 : f32
    %257 = vector.broadcast %cst_63 : f32 to vector<8x128xf32>
    %258 = arith.addf %257, %256 : vector<8x128xf32>
    %cst_64 = arith.constant 5.000000e-01 : f32
    %259 = vector.broadcast %cst_64 : f32 to vector<8x128xf32>
    %260 = arith.mulf %259, %258 : vector<8x128xf32>
    %261 = arith.select %52, %256, %260 : vector<8x128xi1>, vector<8x128xf32>
    %262 = vector.extract_strided_slice %261 {offsets = [0, 0], sizes = [8, 32], strides = [1, 1]} : vector<8x128xf32> to vector<8x32xf32>
    %263 = vector.extract_strided_slice %261 {offsets = [0, 32], sizes = [8, 32], strides = [1, 1]} : vector<8x128xf32> to vector<8x32xf32>
    %264 = vector.extract_strided_slice %261 {offsets = [0, 64], sizes = [8, 32], strides = [1, 1]} : vector<8x128xf32> to vector<8x32xf32>
    %265 = vector.extract_strided_slice %261 {offsets = [0, 96], sizes = [8, 32], strides = [1, 1]} : vector<8x128xf32> to vector<8x32xf32>
    %266 = arith.mulf %263, %219 : vector<8x32xf32>
    %267 = arith.mulf %262, %264 : vector<8x32xf32>
    %268 = arith.addf %266, %267 : vector<8x32xf32>
    %269 = math.tanh %268 : vector<8x32xf32>
    %270 = arith.mulf %265, %269 : vector<8x32xf32>
    %271 = arith.truncf %270 : vector<8x32xf32> to vector<8x32xbf16>
    %cst_65 = arith.constant dense<0.000000e+00> : vector<8x130xf32>
    %272 = tpu.matmul %271, %53, %cst_65 {dimension_numbers = #tpu.dot_dimension_numbers<[1], [0], [0], [1], [0, 0, 1, 1], [], []>} : vector<8x32xbf16>, vector<32x130xbf16>, vector<8x130xf32> -> vector<8x130xf32>
    %273 = vector.extract_strided_slice %272 {offsets = [0, 128], sizes = [8, 2], strides = [1, 1]} : vector<8x130xf32> to vector<8x2xf32>
    %274 = vector.broadcast %54 : vector<1x2xf32> to vector<8x2xf32>
    %275 = arith.addf %273, %274 : vector<8x2xf32>
    %276 = vector.extract_strided_slice %275 {offsets = [0, 0], sizes = [8, 1], strides = [1, 1]} : vector<8x2xf32> to vector<8x1xf32>
    %cst_66 = arith.constant 5.000000e-01 : f32
    %277 = vector.broadcast %cst_66 : f32 to vector<8x1xf32>
    %278 = arith.mulf %277, %276 : vector<8x1xf32>
    %279 = math.tanh %278 : vector<8x1xf32>
    %cst_67 = arith.constant 1.000000e+00 : f32
    %280 = vector.broadcast %cst_67 : f32 to vector<8x1xf32>
    %281 = arith.addf %280, %279 : vector<8x1xf32>
    %cst_68 = arith.constant 5.000000e-01 : f32
    %282 = vector.broadcast %cst_68 : f32 to vector<8x1xf32>
    %283 = arith.mulf %282, %281 : vector<8x1xf32>
    %284 = vector.extract_strided_slice %275 {offsets = [0, 1], sizes = [8, 1], strides = [1, 1]} : vector<8x2xf32> to vector<8x1xf32>
    %285 = vector.extract_strided_slice %15 {offsets = [40, 0], sizes = [8, 1], strides = [1, 1]} : vector<64x1xi1> to vector<8x1xi1>
    %cst_69 = arith.constant 0.000000e+00 : f32
    %286 = vector.broadcast %cst_69 : f32 to vector<8x1xf32>
    %287 = arith.select %285, %283, %286 : vector<8x1xi1>, vector<8x1xf32>
    %288 = vector.broadcast %287 : vector<8x1xf32> to vector<8x128xf32>
    %289 = vector.broadcast %12 : vector<1x128xf32> to vector<8x128xf32>
    %290 = arith.mulf %288, %289 : vector<8x128xf32>
    %291 = arith.mulf %283, %284 : vector<8x1xf32>
    %cst_70 = arith.constant 0.000000e+00 : f32
    %292 = vector.broadcast %cst_70 : f32 to vector<8x1xf32>
    %293 = arith.select %285, %291, %292 : vector<8x1xi1>, vector<8x1xf32>
    %294 = vector.broadcast %293 : vector<8x1xf32> to vector<8x128xf32>
    %295 = vector.broadcast %13 : vector<1x128xf32> to vector<8x128xf32>
    %296 = arith.mulf %294, %295 : vector<8x128xf32>
    %297 = arith.addf %290, %296 : vector<8x128xf32>
    %298 = vector.extract_strided_slice %46 {offsets = [40, 0], sizes = [8, 128], strides = [1, 1]} : vector<64x128xf32> to vector<8x128xf32>
    %299 = vector.extract_strided_slice %272 {offsets = [0, 0], sizes = [8, 128], strides = [1, 1]} : vector<8x130xf32> to vector<8x128xf32>
    %300 = arith.addf %298, %299 : vector<8x128xf32>
    %301 = arith.addf %300, %297 : vector<8x128xf32>
    %cst_71 = arith.constant 5.000000e-01 : f32
    %302 = vector.broadcast %cst_71 : f32 to vector<8x128xf32>
    %303 = arith.mulf %302, %301 : vector<8x128xf32>
    %304 = arith.select %52, %301, %303 : vector<8x128xi1>, vector<8x128xf32>
    %305 = math.tanh %304 : vector<8x128xf32>
    %cst_72 = arith.constant 1.000000e+00 : f32
    %306 = vector.broadcast %cst_72 : f32 to vector<8x128xf32>
    %307 = arith.addf %306, %305 : vector<8x128xf32>
    %cst_73 = arith.constant 5.000000e-01 : f32
    %308 = vector.broadcast %cst_73 : f32 to vector<8x128xf32>
    %309 = arith.mulf %308, %307 : vector<8x128xf32>
    %310 = arith.select %52, %305, %309 : vector<8x128xi1>, vector<8x128xf32>
    %311 = vector.extract_strided_slice %310 {offsets = [0, 0], sizes = [8, 32], strides = [1, 1]} : vector<8x128xf32> to vector<8x32xf32>
    %312 = vector.extract_strided_slice %310 {offsets = [0, 32], sizes = [8, 32], strides = [1, 1]} : vector<8x128xf32> to vector<8x32xf32>
    %313 = vector.extract_strided_slice %310 {offsets = [0, 64], sizes = [8, 32], strides = [1, 1]} : vector<8x128xf32> to vector<8x32xf32>
    %314 = vector.extract_strided_slice %310 {offsets = [0, 96], sizes = [8, 32], strides = [1, 1]} : vector<8x128xf32> to vector<8x32xf32>
    %315 = arith.mulf %312, %268 : vector<8x32xf32>
    %316 = arith.mulf %311, %313 : vector<8x32xf32>
    %317 = arith.addf %315, %316 : vector<8x32xf32>
    %318 = math.tanh %317 : vector<8x32xf32>
    %319 = arith.mulf %314, %318 : vector<8x32xf32>
    %320 = arith.truncf %319 : vector<8x32xf32> to vector<8x32xbf16>
    %cst_74 = arith.constant dense<0.000000e+00> : vector<8x130xf32>
    %321 = tpu.matmul %320, %53, %cst_74 {dimension_numbers = #tpu.dot_dimension_numbers<[1], [0], [0], [1], [0, 0, 1, 1], [], []>} : vector<8x32xbf16>, vector<32x130xbf16>, vector<8x130xf32> -> vector<8x130xf32>
    %322 = vector.extract_strided_slice %321 {offsets = [0, 128], sizes = [8, 2], strides = [1, 1]} : vector<8x130xf32> to vector<8x2xf32>
    %323 = vector.broadcast %54 : vector<1x2xf32> to vector<8x2xf32>
    %324 = arith.addf %322, %323 : vector<8x2xf32>
    %325 = vector.extract_strided_slice %324 {offsets = [0, 0], sizes = [8, 1], strides = [1, 1]} : vector<8x2xf32> to vector<8x1xf32>
    %cst_75 = arith.constant 5.000000e-01 : f32
    %326 = vector.broadcast %cst_75 : f32 to vector<8x1xf32>
    %327 = arith.mulf %326, %325 : vector<8x1xf32>
    %328 = math.tanh %327 : vector<8x1xf32>
    %cst_76 = arith.constant 1.000000e+00 : f32
    %329 = vector.broadcast %cst_76 : f32 to vector<8x1xf32>
    %330 = arith.addf %329, %328 : vector<8x1xf32>
    %cst_77 = arith.constant 5.000000e-01 : f32
    %331 = vector.broadcast %cst_77 : f32 to vector<8x1xf32>
    %332 = arith.mulf %331, %330 : vector<8x1xf32>
    %333 = vector.extract_strided_slice %324 {offsets = [0, 1], sizes = [8, 1], strides = [1, 1]} : vector<8x2xf32> to vector<8x1xf32>
    %334 = vector.extract_strided_slice %15 {offsets = [48, 0], sizes = [8, 1], strides = [1, 1]} : vector<64x1xi1> to vector<8x1xi1>
    %cst_78 = arith.constant 0.000000e+00 : f32
    %335 = vector.broadcast %cst_78 : f32 to vector<8x1xf32>
    %336 = arith.select %334, %332, %335 : vector<8x1xi1>, vector<8x1xf32>
    %337 = vector.broadcast %336 : vector<8x1xf32> to vector<8x128xf32>
    %338 = vector.broadcast %12 : vector<1x128xf32> to vector<8x128xf32>
    %339 = arith.mulf %337, %338 : vector<8x128xf32>
    %340 = arith.mulf %332, %333 : vector<8x1xf32>
    %cst_79 = arith.constant 0.000000e+00 : f32
    %341 = vector.broadcast %cst_79 : f32 to vector<8x1xf32>
    %342 = arith.select %334, %340, %341 : vector<8x1xi1>, vector<8x1xf32>
    %343 = vector.broadcast %342 : vector<8x1xf32> to vector<8x128xf32>
    %344 = vector.broadcast %13 : vector<1x128xf32> to vector<8x128xf32>
    %345 = arith.mulf %343, %344 : vector<8x128xf32>
    %346 = arith.addf %339, %345 : vector<8x128xf32>
    %347 = vector.extract_strided_slice %46 {offsets = [48, 0], sizes = [8, 128], strides = [1, 1]} : vector<64x128xf32> to vector<8x128xf32>
    %348 = vector.extract_strided_slice %321 {offsets = [0, 0], sizes = [8, 128], strides = [1, 1]} : vector<8x130xf32> to vector<8x128xf32>
    %349 = arith.addf %347, %348 : vector<8x128xf32>
    %350 = arith.addf %349, %346 : vector<8x128xf32>
    %cst_80 = arith.constant 5.000000e-01 : f32
    %351 = vector.broadcast %cst_80 : f32 to vector<8x128xf32>
    %352 = arith.mulf %351, %350 : vector<8x128xf32>
    %353 = arith.select %52, %350, %352 : vector<8x128xi1>, vector<8x128xf32>
    %354 = math.tanh %353 : vector<8x128xf32>
    %cst_81 = arith.constant 1.000000e+00 : f32
    %355 = vector.broadcast %cst_81 : f32 to vector<8x128xf32>
    %356 = arith.addf %355, %354 : vector<8x128xf32>
    %cst_82 = arith.constant 5.000000e-01 : f32
    %357 = vector.broadcast %cst_82 : f32 to vector<8x128xf32>
    %358 = arith.mulf %357, %356 : vector<8x128xf32>
    %359 = arith.select %52, %354, %358 : vector<8x128xi1>, vector<8x128xf32>
    %360 = vector.extract_strided_slice %359 {offsets = [0, 0], sizes = [8, 32], strides = [1, 1]} : vector<8x128xf32> to vector<8x32xf32>
    %361 = vector.extract_strided_slice %359 {offsets = [0, 32], sizes = [8, 32], strides = [1, 1]} : vector<8x128xf32> to vector<8x32xf32>
    %362 = vector.extract_strided_slice %359 {offsets = [0, 64], sizes = [8, 32], strides = [1, 1]} : vector<8x128xf32> to vector<8x32xf32>
    %363 = vector.extract_strided_slice %359 {offsets = [0, 96], sizes = [8, 32], strides = [1, 1]} : vector<8x128xf32> to vector<8x32xf32>
    %364 = arith.mulf %361, %317 : vector<8x32xf32>
    %365 = arith.mulf %360, %362 : vector<8x32xf32>
    %366 = arith.addf %364, %365 : vector<8x32xf32>
    %367 = math.tanh %366 : vector<8x32xf32>
    %368 = arith.mulf %363, %367 : vector<8x32xf32>
    %369 = arith.truncf %368 : vector<8x32xf32> to vector<8x32xbf16>
    %cst_83 = arith.constant dense<0.000000e+00> : vector<8x130xf32>
    %370 = tpu.matmul %369, %53, %cst_83 {dimension_numbers = #tpu.dot_dimension_numbers<[1], [0], [0], [1], [0, 0, 1, 1], [], []>} : vector<8x32xbf16>, vector<32x130xbf16>, vector<8x130xf32> -> vector<8x130xf32>
    %371 = vector.extract_strided_slice %370 {offsets = [0, 128], sizes = [8, 2], strides = [1, 1]} : vector<8x130xf32> to vector<8x2xf32>
    %372 = vector.broadcast %54 : vector<1x2xf32> to vector<8x2xf32>
    %373 = arith.addf %371, %372 : vector<8x2xf32>
    %374 = vector.extract_strided_slice %373 {offsets = [0, 0], sizes = [8, 1], strides = [1, 1]} : vector<8x2xf32> to vector<8x1xf32>
    %cst_84 = arith.constant 5.000000e-01 : f32
    %375 = vector.broadcast %cst_84 : f32 to vector<8x1xf32>
    %376 = arith.mulf %375, %374 : vector<8x1xf32>
    %377 = math.tanh %376 : vector<8x1xf32>
    %cst_85 = arith.constant 1.000000e+00 : f32
    %378 = vector.broadcast %cst_85 : f32 to vector<8x1xf32>
    %379 = arith.addf %378, %377 : vector<8x1xf32>
    %cst_86 = arith.constant 5.000000e-01 : f32
    %380 = vector.broadcast %cst_86 : f32 to vector<8x1xf32>
    %381 = arith.mulf %380, %379 : vector<8x1xf32>
    %382 = vector.extract_strided_slice %373 {offsets = [0, 1], sizes = [8, 1], strides = [1, 1]} : vector<8x2xf32> to vector<8x1xf32>
    %383 = vector.extract_strided_slice %15 {offsets = [56, 0], sizes = [8, 1], strides = [1, 1]} : vector<64x1xi1> to vector<8x1xi1>
    %cst_87 = arith.constant 0.000000e+00 : f32
    %384 = vector.broadcast %cst_87 : f32 to vector<8x1xf32>
    %385 = arith.select %383, %381, %384 : vector<8x1xi1>, vector<8x1xf32>
    %386 = vector.broadcast %385 : vector<8x1xf32> to vector<8x128xf32>
    %387 = vector.broadcast %12 : vector<1x128xf32> to vector<8x128xf32>
    %388 = arith.mulf %386, %387 : vector<8x128xf32>
    %389 = arith.mulf %381, %382 : vector<8x1xf32>
    %cst_88 = arith.constant 0.000000e+00 : f32
    %390 = vector.broadcast %cst_88 : f32 to vector<8x1xf32>
    %391 = arith.select %383, %389, %390 : vector<8x1xi1>, vector<8x1xf32>
    %392 = vector.broadcast %391 : vector<8x1xf32> to vector<8x128xf32>
    %393 = vector.broadcast %13 : vector<1x128xf32> to vector<8x128xf32>
    %394 = arith.mulf %392, %393 : vector<8x128xf32>
    %395 = arith.addf %388, %394 : vector<8x128xf32>
    %396 = vector.extract_strided_slice %46 {offsets = [56, 0], sizes = [8, 128], strides = [1, 1]} : vector<64x128xf32> to vector<8x128xf32>
    %397 = vector.extract_strided_slice %370 {offsets = [0, 0], sizes = [8, 128], strides = [1, 1]} : vector<8x130xf32> to vector<8x128xf32>
    %398 = arith.addf %396, %397 : vector<8x128xf32>
    %399 = arith.addf %398, %395 : vector<8x128xf32>
    %cst_89 = arith.constant 5.000000e-01 : f32
    %400 = vector.broadcast %cst_89 : f32 to vector<8x128xf32>
    %401 = arith.mulf %400, %399 : vector<8x128xf32>
    %402 = arith.select %52, %399, %401 : vector<8x128xi1>, vector<8x128xf32>
    %403 = math.tanh %402 : vector<8x128xf32>
    %cst_90 = arith.constant 1.000000e+00 : f32
    %404 = vector.broadcast %cst_90 : f32 to vector<8x128xf32>
    %405 = arith.addf %404, %403 : vector<8x128xf32>
    %cst_91 = arith.constant 5.000000e-01 : f32
    %406 = vector.broadcast %cst_91 : f32 to vector<8x128xf32>
    %407 = arith.mulf %406, %405 : vector<8x128xf32>
    %408 = arith.select %52, %403, %407 : vector<8x128xi1>, vector<8x128xf32>
    %409 = vector.extract_strided_slice %408 {offsets = [0, 0], sizes = [8, 32], strides = [1, 1]} : vector<8x128xf32> to vector<8x32xf32>
    %410 = vector.extract_strided_slice %408 {offsets = [0, 32], sizes = [8, 32], strides = [1, 1]} : vector<8x128xf32> to vector<8x32xf32>
    %411 = vector.extract_strided_slice %408 {offsets = [0, 64], sizes = [8, 32], strides = [1, 1]} : vector<8x128xf32> to vector<8x32xf32>
    %412 = vector.extract_strided_slice %408 {offsets = [0, 96], sizes = [8, 32], strides = [1, 1]} : vector<8x128xf32> to vector<8x32xf32>
    %413 = arith.mulf %410, %366 : vector<8x32xf32>
    %414 = arith.mulf %409, %411 : vector<8x32xf32>
    %415 = arith.addf %413, %414 : vector<8x32xf32>
    %416 = math.tanh %415 : vector<8x32xf32>
    %417 = arith.mulf %412, %416 : vector<8x32xf32>
    %418 = arith.truncf %417 : vector<8x32xf32> to vector<8x32xbf16>
    %419 = vector.extract_strided_slice %53 {offsets = [0, 128], sizes = [32, 2], strides = [1, 1]} : vector<32x130xbf16> to vector<32x2xbf16>
    %cst_92 = arith.constant dense<0.000000e+00> : vector<8x2xf32>
    %420 = tpu.matmul %418, %419, %cst_92 {dimension_numbers = #tpu.dot_dimension_numbers<[1], [0], [0], [1], [0, 0, 1, 1], [], []>} : vector<8x32xbf16>, vector<32x2xbf16>, vector<8x2xf32> -> vector<8x2xf32>
    %421 = vector.broadcast %54 : vector<1x2xf32> to vector<8x2xf32>
    %422 = arith.addf %420, %421 : vector<8x2xf32>
    %423 = vector.extract_strided_slice %422 {offsets = [0, 0], sizes = [8, 1], strides = [1, 1]} : vector<8x2xf32> to vector<8x1xf32>
    %cst_93 = arith.constant 5.000000e-01 : f32
    %424 = vector.broadcast %cst_93 : f32 to vector<8x1xf32>
    %425 = arith.mulf %424, %423 : vector<8x1xf32>
    %426 = math.tanh %425 : vector<8x1xf32>
    %cst_94 = arith.constant 1.000000e+00 : f32
    %427 = vector.broadcast %cst_94 : f32 to vector<8x1xf32>
    %428 = arith.addf %427, %426 : vector<8x1xf32>
    %cst_95 = arith.constant 5.000000e-01 : f32
    %429 = vector.broadcast %cst_95 : f32 to vector<8x1xf32>
    %430 = arith.mulf %429, %428 : vector<8x1xf32>
    %431 = vector.extract_strided_slice %422 {offsets = [0, 1], sizes = [8, 1], strides = [1, 1]} : vector<8x2xf32> to vector<8x1xf32>
    %432 = tpu.concatenate %87, %136, %185, %234, %283, %332, %381, %430 in 1 : vector<8x1xf32>, vector<8x1xf32>, vector<8x1xf32>, vector<8x1xf32>, vector<8x1xf32>, vector<8x1xf32>, vector<8x1xf32>, vector<8x1xf32> -> vector<8x8xf32>
    %c0_96 = arith.constant 0 : index
    %c0_97 = arith.constant 0 : index
    %433 = vector.load %arg10[%c0_96, %c0_97] : memref<8x8xf32, #tpu.memory_space<vmem>>, vector<8x8xf32>
    tpu.vector_store %arg10[%c0_96, %c0_97], %432 {strides = array<i32>} : memref<8x8xf32, #tpu.memory_space<vmem>>, vector<8x8xf32>,
    %434 = tpu.concatenate %88, %137, %186, %235, %284, %333, %382, %431 in 1 : vector<8x1xf32>, vector<8x1xf32>, vector<8x1xf32>, vector<8x1xf32>, vector<8x1xf32>, vector<8x1xf32>, vector<8x1xf32>, vector<8x1xf32> -> vector<8x8xf32>
    %c0_98 = arith.constant 0 : index
    %c0_99 = arith.constant 0 : index
    %435 = vector.load %arg11[%c0_98, %c0_99] : memref<8x8xf32, #tpu.memory_space<vmem>>, vector<8x8xf32>
    tpu.vector_store %arg11[%c0_98, %c0_99], %434 {strides = array<i32>} : memref<8x8xf32, #tpu.memory_space<vmem>>, vector<8x8xf32>,
    return
  }
}

</mosaic_0001>

<bundles_post_ra>
// kernel: tpu_custom_call.1
= control target key start
LH: loop header
LB: loop body
LE: loop exit
PB: predicated region body
PF: predicated region fallthrough
CT: control target
= control target key end

     0   :  { %17 = vsyncpa [#allocation3], 0  ;;  %v1645_v2 = vmov 0.0|0.0   ;;  %vm1646_vm0 = vmmov 0   ;;  %v1647_v5 = vmov 0.0   ;;  %s1648_s23 = smov 127   ;;  %s2223_s0 = inlined_call_operand.vmem [shape: f32[8,19], index: 0, kind: input, shape index: {}]   ;;  %s2224_s1 = inlined_call_operand.vmem [shape: f32[64,4], index: 1, kind: input, shape index: {}]   ;;  %s2225_s2 = inlined_call_operand.vmem [shape: f32[19,16], index: 2, kind: input, shape index: {}]   ;;  %s2226_s3 = inlined_call_operand.vmem [shape: f32[1,16], index: 3, kind: input, shape index: {}]   ;;  %s2227_s4 = inlined_call_operand.vmem [shape: f32[2,128], index: 4, kind: input, shape index: {}]   ;;  %s2228_s5 = inlined_call_operand.vmem [shape: f32[2,128], index: 5, kind: input, shape index: {}]   ;;  %s2229_s6 = inlined_call_operand.vmem [shape: f32[16,128], index: 6, kind: input, shape index: {}]   ;;  %s2230_s7 = inlined_call_operand.vmem [shape: f32[1,128], index: 7, kind: input, shape index: {}]   ;;  %s2231_s8 = inlined_call_operand.vmem [shape: bf16[32,130], index: 8, kind: input, shape index: {}]   ;;  %s2232_s9 = inlined_call_operand.vmem [shape: f32[1,2], index: 9, kind: input, shape index: {}]   ;;  %s2233_s10 = inlined_call_operand.hbm [shape: f32[8,8], index: 10, kind: output, shape index: {0}]   ;;  %s2234_s11 = inlined_call_operand.hbm [shape: f32[8,8], index: 11, kind: output, shape index: {1}]  }
   0x1   :  { %v41_v0 = vld [vmem:[%s2225_s2] sm:$0xff]  ;;  %v42_v1 = vld [vmem:[%s2225_s2 + $0x8] sm:$0xff]  ;;  %1481 = vmatprep.subr.bf16.mxu0 %v1645_v2  ;;  %1484 = vmatprep.subr.bf16.mxu1 %v1645_v2 }
   0x2   :  { %v1482_v3 = vpack.c.bf16 %v42_v1, %v41_v0  ;;  %v212_v4 = vld [vmem:[%s2224_s1] sm:$0xff]  ;;  %1463 = vmatprep.mubr.msk.f32.mxu0 %vm1646_vm0, %v1647_v5  ;;  %1470 = vmatprep.mubr.msk.f32.mxu1 %vm1646_vm0, %v1647_v5 }
   0x3   :  { %271 = vrot.lane.b32.xlu0 %v212_v4, %s1648_s23 }
   0x4   :  { %1483 = vmatpush3.bf16.msra.mxu0 %v1482_v3 }
   0x5   :  { %18 = vsyncpa [#allocation5], 0  ;;  %1461 = vmatprep.subr.mxu0 %v1647_v5  ;;  %v43_v6 = vld [vmem:[%s2225_s2 + $0x10] sm:$0x7]  ;;  %vm55_vm1 = vcmask 1042432   ;;  %v40_v7 = vld [vmem:[%s2223_s0] sm:$0xff]  ;;  %v529_v29 = vlaneseq }
   0x6   :  { %vm51_vm2 = vcmask 154624   ;;  %v129_v8 = vld [vmem:[%s2229_s6] sm:$0xff]  ;;  %v130_v9 = vld [vmem:[%s2229_s6 + $0x8] sm:$0xff]  ;;  %v1649_v11 = vmov 2   ;;  %v1650_v12 = vmov 0   ;;  %v1651_v14 = vmov 3  }
   0x7   :  { %v1485_v10 = vpack.c.bf16 %v130_v9, %v129_v8  ;;  %1506 = vset.pattern.permute.xlu1 %v1649_v11  ;;  %1505 = vset.pattern.permute.xlu0 %v1650_v12  ;;  %v1425_v15 = vld [vmem:[%s2226_s3] ss:$0 sm:$0xff]  ;;  %vm138_vm3 = vcmask 130048   ;;  %v1763_v20 = vld [vmem:[%s2227_s4 + $0x1] ss:$0 sm:$0xff]  ;;  %v530_v34 = vand.u32 127, %v529_v29 }
   0x8   :  { %1462 = vmatpush3.msk.msra.mxu0 %vm55_vm1, %v43_v6  ;;  %417 = vperm.xlu1 %1506, %v212_v4   ;;  %v1768_v22 = vld [vmem:[%s2227_s4] ss:$0 sm:$0xff]  ;;  %v1781_v30 = vld [vmem:[%s2228_s5 + $0x1] ss:$0 sm:$0xff]  ;;  %s1653_s21 = smov 32   ;;  %v213_v54 = vld [vmem:[%s2224_s1 + $0x8] sm:$0xff] }
   0x9   :  { %1464 = vmatmul.mubr.msk.f32.vlgmr.msra.gmra.mrb[0].mxu0 %vm51_vm2, %v40_v7  ;;  %1486 = vmatpush3.bf16.msra.mxu1 %v1485_v10  ;;  %v1775_v26 = vld [vmem:[%s2228_s5] ss:$0 sm:$0xff]  ;;  %vm531_vm4 = vcmp.ge.s32.totalorder %v530_v34, 64  ;;  %vm532_vm5 = vcmp.lt.s32.totalorder %v530_v34, 96  ;;  %vm223_vm7 = vcmp.ne.f32.partialorder %v213_v54, %v213_v54  ;;  %v1812_v56 = vld [vmem:[%s2231_s8 + $0x4] ss:$8 sps:$4 sm:$0xff]  }
   0xa   :  { %305 = vperm.xlu0 %1505, %v212_v4   ;;  %726 = vmatprep.mubr.bf16.mxu0 %v1650_v12  ;;  %v1428_v35 = vld [vmem:[%s2230_s7] ss:$0 sm:$0xff]  ;;  %vm1790_vm6 = vmand %vm531_vm4, %vm532_vm5  ;;  %s1652_s7 = smov 64   ;;  %v256_v55 = vsel %vm223_vm7, 0.0, %v213_v54  ;;  %v1822_v58 = vld [vmem:[%s2231_s8 + $0x14] ss:$8 sps:$4 sm:$0xff]  }
   0xb   :  { %v1817_v57 = vld [vmem:[%s2231_s8] ss:$8 sps:$4 sm:$0xff]   ;;  %590 = vmatprep.subr.bf16.mxu1 %v1812_v56  ;;  %694 = vmatprep.subr.bf16.mxu0 %v1812_v56  ;;  %v1830_v59 = vld [vmem:[%s2231_s8 + $0x10] ss:$8 sps:$4 sm:$0xff]   ;;  %vm586_vm8 = vcmask 261120   ;;  %s1656_s12 = smov 3  }
   0xc   :  { %1507 = vset.pattern.permute.xlu1 %v1650_v12  ;;  %695 = vmatpush1.bf16.msra.mxu0 %v1817_v57  ;;  %v1851_v0 = vld [vmem:[%s2232_s9] ss:$0 sm:$0xff]  ;;  %s1657_s0 = smov 4   ;;  %s1658_s8 = smov 5   ;;  %vm1354_vm15 = vcmask 7168   ;;  %vm1358_vm1 = vcmask 23552  }
   0xd   :  { %696 = vmatprep.subr.bf16.mxu0 %v1822_v58  ;;  %vm1360_vm2 = vcmask 31744   ;;  %vm1364_vm4 = vcmask 48128   ;;  %vm1366_vm5 = vcmask 56320  }
  0x10   :  { %697 = vmatpush1.bf16.msra.mxu0 %v1830_v59 }
  0x11   :  { %890 = vmatprep.subr.bf16.mxu0 %v1812_v56 }
  0x75   :  { %v272_v13 = vpop.permute.xlu0 %271 }
  0x76   :  { %357 = vperm.xlu1 %1507, %v272_v13  }
  0x7a   :  { %1508 = vset.pattern.permute.xlu1 %v1651_v14 }
  0x7b   :  { %470 = vperm.xlu1 %1508, %v212_v4  }
  0x7f   :  { %1509 = vset.pattern.permute.xlu1 %v1650_v12 }
  0x87   :  { %v418_v19 = vpop.permute.xlu1 %417 }
  0x88   :  { %v452_v27 = vmul.f32 %v1775_v26, %v418_v19 }
  0x89   :  { %v306_v23 = vpop.permute.xlu0 %305 }
  0x8a   :  { %v347_v25 = vmul.f32 %v1768_v22, %v306_v23 }
  0xdc   :  { %v125_v16 = vpop.f32.mrb[0].mxu0 }
  0xdd   :  { %v126_v17 = vadd.f32 %v1425_v15, %v125_v16  ;;  %v1465_v18 = vpop.f32.mrb[1].mxu0 }
  0xdf   :  { %1471 = vmatmul.mubr.msk.f32.vlgmr.msra.gmra.mrb[0].mxu1 %vm138_vm3, %v126_v17  ;;  %vm1362_vm3 = vcmask 39936  }
  0xe0   :  { %622 = vmatprep.mubr.bf16.mxu1 %v1650_v12  ;;  %591 = vmatpush1.bf16.msra.mxu1 %v1817_v57 }
  0xe1   :  { %592 = vmatprep.subr.bf16.mxu1 %v1822_v58 }
  0xe4   :  { %593 = vmatpush1.bf16.msra.mxu1 %v1830_v59 }
  0xe5   :  { %792 = vmatprep.subr.bf16.mxu1 %v1812_v56 }
  0xf5   :  { %v358_v21 = vpop.permute.xlu1 %357 }
  0xf6   :  { %v399_v24 = vmul.f32 %v1763_v20, %v358_v21 }
  0xf8   :  { %v407_v28 = vadd.f32 %v399_v24, %v347_v25 }
  0xfa   :  { %v471_v31 = vpop.permute.xlu1 %470  ;;  %v460_v32 = vadd.f32 %v452_v27, %v407_v28 }
  0xfb   :  { %v505_v33 = vmul.f32 %v1781_v30, %v471_v31 }
  0xfd   :  { %v513_v37 = vadd.f32 %v505_v33, %v460_v32 }
 0x1b2   :  { %v208_v36 = vpop.f32.mrb[0].mxu1 }
 0x1b3   :  { %v1787_v38 = vadd.f32 %v1428_v35, %v208_v36  ;;  %v1472_v39 = vpop.f32.mrb[1].mxu1 }
 0x1b5   :  { %v521_v40 = vadd.f32 %v513_v37, %v1787_v38 }
 0x1b7   :  { %v539_v42 = vmul.f32 0.5, %v521_v40 }
 0x1b9   :  { %v540_v43 = vsel %vm1790_vm6, %v521_v40, %v539_v42 }
 0x1ba   :  { %1544 = vtanh.f32 %v540_v43 }
 0x1c4   :  { %v1545_v44 = vpop.eup %1544 }
 0x1c5   :  { %v542_v45 = vadd.f32 1.0, %v1545_v44 }
 0x1c7   :  { %v543_v46 = vmul.f32 0.5, %v542_v45 }
 0x1c9   :  { %v544_v47 = vsel %vm1790_vm6, %v1545_v44, %v543_v46 }
 0x1ca   :  { %547 = vrot.lane.b32.xlu0 %v544_v47, %s1652_s7  ;;  %v545_v50 = vmul.f32 0.0, %v544_v47 }
 0x23c   :  { %v548_v48 = vpop.permute.xlu0 %547 }
 0x23d   :  { %v550_v49 = vmul.f32 %v548_v48, %v544_v47 }
 0x23f   :  { %552 = vrot.lane.b32.xlu1 %v550_v49, %s1653_s21 }
 0x2b1   :  { %v553_v51 = vpop.permute.xlu1 %552 }
 0x2b2   :  { %v1800_v52 = vadd.f32 %v553_v51, %v545_v50 }
 0x2b4   :  { %1546 = vtanh.f32 %v1800_v52 }
 0x2be   :  { %v1547_v53 = vpop.eup %1546 }
 0x2bf   :  { %558 = vrot.lane.b32.xlu0 %v1547_v53, %s1652_s7 }
 0x2c3   :  { %273 = vrot.lane.b32.xlu0 %v213_v54, %s1648_s23 }
 0x2c7   :  { %310 = vperm.xlu0 %1505, %v256_v55  }
 0x2cb   :  { %1510 = vset.pattern.permute.xlu0 %v1649_v11 }
 0x2cc   :  { %421 = vperm.xlu0 %1510, %v213_v54  }
 0x2d0   :  { %1513 = vset.pattern.permute.xlu0 %v1650_v12 }
 0x331   :  { %v559_v60 = vpop.permute.xlu0 %558 }
 0x332   :  { %v561_v61 = vmul.f32 %v559_v60, %v544_v47 }
 0x334   :  { %v562_v62 = vpack.c.bf16 %v561_v61, %v561_v61 }
 0x335   :  { %v274_v7 = vpop.permute.xlu0 %273 }
 0x336   :  { %564 = vrot.lane.b32.xlu1 %v562_v62, %s1653_s21  ;;  %v296_v9 = vsel %vm223_vm7, 0.0, %v274_v7  ;;  %v214_v62 = vld [vmem:[%s2224_s1 + $0x10] sm:$0xff] }
 0x337   :  { %vm224_vm9 = vcmp.ne.f32.partialorder %v214_v62, %v214_v62 }
 0x346   :  { %v311_v21 = vpop.permute.xlu0 %310 }
 0x347   :  { %v348_v27 = vmul.f32 %v1768_v22, %v311_v21 }
 0x34b   :  { %v422_v25 = vpop.permute.xlu0 %421 }
 0x34c   :  { %v453_v29 = vmul.f32 %v1775_v26, %v422_v25 }
 0x3a8   :  { %v565_v63 = vpop.permute.xlu1 %564 }
 0x3a9   :  { %1438 = vmatmul.mubr.msk.bf16.vlgmr.msra.gmra.mrb[4].mxu1 %vm586_vm8, %v565_v63  ;;  %v257_v63 = vsel %vm224_vm9, 0.0, %v214_v62 }
 0x3aa   :  { %793 = vmatpush1.bf16.msra.mxu1 %v1817_v57  ;;  %824 = vmatprep.mubr.bf16.mxu1 %v1650_v12 }
 0x3ab   :  { %794 = vmatprep.subr.bf16.mxu1 %v1822_v58 }
 0x3ae   :  { %795 = vmatpush1.bf16.msra.mxu1 %v1830_v59 }
 0x3af   :  { %988 = vmatprep.subr.bf16.mxu1 %v1812_v56 }
 0x47c   :  { %v624_v1 = vpop.f32.mrb[4].mxu1 }
 0x47d   :  { %v626_v2 = vpop.f32.mrb[5].mxu1 }
 0x47e   :  { %v637_v3 = vadd.f32 %v1851_v0, %v626_v2  ;;  %v628_v4 = vpop.f32.mrb[6].mxu1 }
 0x47f   :  { %v629_v6 = vpop.f32.mrb[7].mxu1 }
 0x480   :  { %v638_v8 = vmul.f32 0.5, %v637_v3  ;;  %650 = vrot.lane.b32.xlu1 %v637_v3, %s1648_s23 }
 0x482   :  { %1548 = vtanh.f32 %v638_v8 }
 0x484   :  { %362 = vperm.xlu1 %1509, %v296_v9  }
 0x488   :  { %1511 = vset.pattern.permute.xlu1 %v1651_v14 }
 0x489   :  { %474 = vperm.xlu1 %1511, %v213_v54  }
 0x48c   :  { %v1549_v10 = vpop.eup %1548 }
 0x48d   :  { %v640_v13 = vadd.f32 1.0, %v1549_v10  ;;  %1512 = vset.pattern.permute.xlu1 %v1650_v12 }
 0x48f   :  { %v1858_v15 = vmul.f32 0.5, %v640_v13 }
 0x491   :  { %v642_v16 = vsel %vm223_vm7, %v1858_v15, 0.0 }
 0x492   :  { %645 = vperm.xlu1 %1512, %v642_v16  }
 0x4f2   :  { %v1862_v17 = vpop.permute.xlu1 %650 }
 0x4f3   :  { %v653_v18 = vmul.f32 %v1862_v17, %v1858_v15 }
 0x4f5   :  { %v654_v19 = vsel %vm223_vm7, %v653_v18, 0.0 }
 0x4f6   :  { %657 = vperm.xlu0 %1513, %v654_v19  }
 0x503   :  { %v363_v23 = vpop.permute.xlu1 %362 }
 0x504   :  { %v400_v24 = vmul.f32 %v1763_v20, %v363_v23 }
 0x506   :  { %v408_v28 = vadd.f32 %v400_v24, %v348_v27 }
 0x508   :  { %v475_v31 = vpop.permute.xlu1 %474  ;;  %v461_v32 = vadd.f32 %v453_v29, %v408_v28 }
 0x509   :  { %v506_v33 = vmul.f32 %v1781_v30, %v475_v31 }
 0x50b   :  { %v514_v34 = vadd.f32 %v506_v33, %v461_v32 }
 0x50d   :  { %v522_v36 = vadd.f32 %v514_v34, %v1787_v38 }
 0x50f   :  { %v662_v42 = vadd.f32 %v624_v1, %v522_v36 }
 0x511   :  { %v646_v35 = vpop.permute.xlu1 %645 }
 0x512   :  { %v648_v39 = vmul.f32 %v1768_v22, %v646_v35 }
 0x575   :  { %v658_v37 = vpop.permute.xlu0 %657 }
 0x576   :  { %v660_v40 = vmul.f32 %v1763_v20, %v658_v37 }
 0x578   :  { %v661_v43 = vadd.f32 %v660_v40, %v648_v39 }
 0x57a   :  { %v663_v44 = vadd.f32 %v662_v42, %v661_v43 }
 0x57c   :  { %v664_v45 = vmul.f32 0.5, %v663_v44 }
 0x57e   :  { %v665_v46 = vsel %vm1790_vm6, %v663_v44, %v664_v45 }
 0x57f   :  { %1550 = vtanh.f32 %v665_v46 }
 0x589   :  { %v1551_v47 = vpop.eup %1550 }
 0x58a   :  { %v667_v48 = vadd.f32 1.0, %v1551_v47 }
 0x58c   :  { %v668_v49 = vmul.f32 0.5, %v667_v48 }
 0x58e   :  { %v669_v50 = vsel %vm1790_vm6, %v1551_v47, %v668_v49 }
 0x58f   :  { %672 = vrot.lane.b32.xlu1 %v669_v50, %s1652_s7  ;;  %v670_v54 = vmul.f32 %v669_v50, %v1800_v52 }
 0x601   :  { %v673_v51 = vpop.permute.xlu1 %672 }
 0x602   :  { %v675_v53 = vmul.f32 %v673_v51, %v669_v50 }
 0x604   :  { %677 = vrot.lane.b32.xlu1 %v675_v53, %s1653_s21 }
 0x676   :  { %v678_v55 = vpop.permute.xlu1 %677 }
 0x677   :  { %v1881_v60 = vadd.f32 %v678_v55, %v670_v54 }
 0x679   :  { %1552 = vtanh.f32 %v1881_v60 }
 0x683   :  { %v1553_v61 = vpop.eup %1552 }
 0x684   :  { %683 = vrot.lane.b32.xlu0 %v1553_v61, %s1652_s7 }
 0x688   :  { %275 = vrot.lane.b32.xlu0 %v214_v62, %s1648_s23 }
 0x68c   :  { %315 = vperm.xlu0 %1513, %v257_v63  }
 0x690   :  { %1514 = vset.pattern.permute.xlu0 %v1649_v11 }
 0x691   :  { %425 = vperm.xlu0 %1514, %v214_v62  }
 0x695   :  { %1517 = vset.pattern.permute.xlu0 %v1650_v12 }
 0x6f6   :  { %v684_v52 = vpop.permute.xlu0 %683 }
 0x6f7   :  { %v686_v1 = vmul.f32 %v684_v52, %v669_v50 }
 0x6f9   :  { %v687_v2 = vpack.c.bf16 %v686_v1, %v686_v1 }
 0x6fa   :  { %v276_v10 = vpop.permute.xlu0 %275 }
 0x6fb   :  { %689 = vrot.lane.b32.xlu1 %v687_v2, %s1653_s21  ;;  %v297_v16 = vsel %vm224_vm9, 0.0, %v276_v10 }
 0x70b   :  { %v316_v28 = vpop.permute.xlu0 %315 }
 0x70c   :  { %v349_v33 = vmul.f32 %v1768_v22, %v316_v28 }
 0x710   :  { %v426_v32 = vpop.permute.xlu0 %425 }
 0x711   :  { %v454_v35 = vmul.f32 %v1775_v26, %v426_v32 }
 0x76d   :  { %v690_v3 = vpop.permute.xlu1 %689 }
 0x76e   :  { %1440 = vmatmul.mubr.msk.bf16.vlgmr.msra.gmra.mrb[4].mxu0 %vm586_vm8, %v690_v3 }
 0x76f   :  { %891 = vmatpush1.bf16.msra.mxu0 %v1817_v57  ;;  %922 = vmatprep.mubr.bf16.mxu0 %v1650_v12 }
 0x770   :  { %892 = vmatprep.subr.bf16.mxu0 %v1822_v58 }
 0x773   :  { %893 = vmatpush1.bf16.msra.mxu0 %v1830_v59 }
 0x774   :  { %1086 = vmatprep.subr.bf16.mxu0 %v1812_v56 }
 0x841   :  { %v728_v4 = vpop.f32.mrb[4].mxu0 }
 0x842   :  { %v730_v6 = vpop.f32.mrb[5].mxu0 }
 0x843   :  { %v1900_v7 = vadd.f32 %v1851_v0, %v730_v6  ;;  %v732_v8 = vpop.f32.mrb[6].mxu0 }
 0x844   :  { %v733_v9 = vpop.f32.mrb[7].mxu0 }
 0x845   :  { %v736_v13 = vmul.f32 0.5, %v1900_v7  ;;  %748 = vrot.lane.b32.xlu1 %v1900_v7, %s1648_s23 }
 0x847   :  { %1554 = vtanh.f32 %v736_v13 }
 0x849   :  { %367 = vperm.xlu1 %1512, %v297_v16  }
 0x84d   :  { %1515 = vset.pattern.permute.xlu1 %v1651_v14 }
 0x84e   :  { %478 = vperm.xlu1 %1515, %v214_v62  }
 0x851   :  { %v1555_v18 = vpop.eup %1554 }
 0x852   :  { %1516 = vset.pattern.permute.xlu1 %v1650_v12  ;;  %v738_v19 = vadd.f32 1.0, %v1555_v18 }
 0x854   :  { %v1908_v21 = vmul.f32 0.5, %v738_v19 }
 0x856   :  { %v740_v23 = vsel %vm224_vm9, %v1908_v21, 0.0 }
 0x857   :  { %743 = vperm.xlu1 %1516, %v740_v23  }
 0x8b7   :  { %v749_v24 = vpop.permute.xlu1 %748 }
 0x8b8   :  { %v751_v25 = vmul.f32 %v749_v24, %v1908_v21 }
 0x8ba   :  { %v752_v27 = vsel %vm224_vm9, %v751_v25, 0.0 }
 0x8bb   :  { %755 = vperm.xlu0 %1517, %v752_v27  }
 0x8c8   :  { %v368_v29 = vpop.permute.xlu1 %367 }
 0x8c9   :  { %v401_v31 = vmul.f32 %v1763_v20, %v368_v29 }
 0x8cb   :  { %v409_v34 = vadd.f32 %v401_v31, %v349_v33 }
 0x8cd   :  { %v479_v36 = vpop.permute.xlu1 %478  ;;  %v462_v37 = vadd.f32 %v454_v35, %v409_v34 }
 0x8ce   :  { %v507_v39 = vmul.f32 %v1781_v30, %v479_v36 }
 0x8d0   :  { %v515_v40 = vadd.f32 %v507_v39, %v462_v37 }
 0x8d2   :  { %v523_v43 = vadd.f32 %v515_v40, %v1787_v38 }
 0x8d4   :  { %v760_v47 = vadd.f32 %v728_v4, %v523_v43  ;;  %v215_v4 = vld [vmem:[%s2224_s1 + $0x18] sm:$0xff] }
 0x8d5   :  { %vm225_vm10 = vcmp.ne.f32.partialorder %v215_v4, %v215_v4 }
 0x8d6   :  { %v744_v42 = vpop.permute.xlu1 %743  ;;  %v258_v6 = vsel %vm225_vm10, 0.0, %v215_v4 }
 0x8d7   :  { %v746_v45 = vmul.f32 %v1768_v22, %v744_v42 }
 0x93a   :  { %v756_v44 = vpop.permute.xlu0 %755 }
 0x93b   :  { %v758_v46 = vmul.f32 %v1763_v20, %v756_v44 }
 0x93d   :  { %v759_v48 = vadd.f32 %v758_v46, %v746_v45 }
 0x93f   :  { %v761_v49 = vadd.f32 %v760_v47, %v759_v48 }
 0x941   :  { %v762_v50 = vmul.f32 0.5, %v761_v49 }
 0x943   :  { %v763_v51 = vsel %vm1790_vm6, %v761_v49, %v762_v50 }
 0x944   :  { %1556 = vtanh.f32 %v763_v51 }
 0x94e   :  { %v1557_v53 = vpop.eup %1556 }
 0x94f   :  { %v765_v54 = vadd.f32 1.0, %v1557_v53 }
 0x951   :  { %v766_v55 = vmul.f32 0.5, %v765_v54 }
 0x953   :  { %v767_v61 = vsel %vm1790_vm6, %v1557_v53, %v766_v55 }
 0x954   :  { %770 = vrot.lane.b32.xlu1 %v767_v61, %s1652_s7  ;;  %v768_v52 = vmul.f32 %v767_v61, %v1881_v60 }
 0x9c6   :  { %v771_v62 = vpop.permute.xlu1 %770 }
 0x9c7   :  { %v773_v63 = vmul.f32 %v771_v62, %v767_v61 }
 0x9c9   :  { %775 = vrot.lane.b32.xlu1 %v773_v63, %s1653_s21 }
 0xa3b   :  { %v776_v1 = vpop.permute.xlu1 %775 }
 0xa3c   :  { %v1928_v2 = vadd.f32 %v776_v1, %v768_v52 }
 0xa3e   :  { %1558 = vtanh.f32 %v1928_v2 }
 0xa48   :  { %v1559_v3 = vpop.eup %1558 }
 0xa49   :  { %781 = vrot.lane.b32.xlu0 %v1559_v3, %s1652_s7 }
 0xa4d   :  { %277 = vrot.lane.b32.xlu0 %v215_v4, %s1648_s23 }
 0xa51   :  { %320 = vperm.xlu0 %1517, %v258_v6  }
 0xa55   :  { %1518 = vset.pattern.permute.xlu0 %v1649_v11 }
 0xa56   :  { %429 = vperm.xlu0 %1518, %v215_v4  }
 0xa5a   :  { %1521 = vset.pattern.permute.xlu0 %v1650_v12 }
 0xabb   :  { %v782_v60 = vpop.permute.xlu0 %781 }
 0xabc   :  { %v784_v8 = vmul.f32 %v782_v60, %v767_v61 }
 0xabe   :  { %v785_v9 = vpack.c.bf16 %v784_v8, %v784_v8 }
 0xabf   :  { %v278_v24 = vpop.permute.xlu0 %277 }
 0xac0   :  { %787 = vrot.lane.b32.xlu1 %v785_v9, %s1653_s21  ;;  %v298_v27 = vsel %vm225_vm10, 0.0, %v278_v24 }
 0xad0   :  { %v321_v36 = vpop.permute.xlu0 %320 }
 0xad1   :  { %v350_v42 = vmul.f32 %v1768_v22, %v321_v36 }
 0xad5   :  { %v430_v40 = vpop.permute.xlu0 %429 }
 0xad6   :  { %v455_v44 = vmul.f32 %v1775_v26, %v430_v40 }
 0xb32   :  { %v788_v10 = vpop.permute.xlu1 %787 }
 0xb33   :  { %1441 = vmatmul.mubr.msk.bf16.vlgmr.msra.gmra.mrb[8].mxu1 %vm586_vm8, %v788_v10 }
 0xb34   :  { %989 = vmatpush1.bf16.msra.mxu1 %v1817_v57  ;;  %1020 = vmatprep.mubr.bf16.mxu1 %v1650_v12 }
 0xb35   :  { %990 = vmatprep.subr.bf16.mxu1 %v1822_v58 }
 0xb38   :  { %991 = vmatpush1.bf16.msra.mxu1 %v1830_v59 }
 0xb39   :  { %1184 = vmatprep.subr.bf16.mxu1 %v1812_v56 }
 0xc06   :  { %v826_v13 = vpop.f32.mrb[8].mxu1 }
 0xc07   :  { %v828_v16 = vpop.f32.mrb[9].mxu1 }
 0xc08   :  { %v1947_v18 = vadd.f32 %v1851_v0, %v828_v16  ;;  %v830_v19 = vpop.f32.mrb[10].mxu1 }
 0xc09   :  { %v831_v23 = vpop.f32.mrb[11].mxu1  ;;  %v216_v19 = vld [vmem:[%s2224_s1 + $0x20] sm:$0xff] }
 0xc0a   :  { %v834_v25 = vmul.f32 0.5, %v1947_v18  ;;  %846 = vrot.lane.b32.xlu1 %v1947_v18, %s1648_s23  ;;  %vm226_vm11 = vcmp.ne.f32.partialorder %v216_v19, %v216_v19 }
 0xc0b   :  { %v259_v23 = vsel %vm226_vm11, 0.0, %v216_v19 }
 0xc0c   :  { %1560 = vtanh.f32 %v834_v25 }
 0xc0e   :  { %372 = vperm.xlu1 %1516, %v298_v27  }
 0xc12   :  { %1519 = vset.pattern.permute.xlu1 %v1651_v14 }
 0xc13   :  { %482 = vperm.xlu1 %1519, %v215_v4  }
 0xc16   :  { %v1561_v28 = vpop.eup %1560 }
 0xc17   :  { %1520 = vset.pattern.permute.xlu1 %v1650_v12  ;;  %v836_v29 = vadd.f32 1.0, %v1561_v28 }
 0xc19   :  { %v1955_v31 = vmul.f32 0.5, %v836_v29 }
 0xc1b   :  { %v838_v32 = vsel %vm225_vm10, %v1955_v31, 0.0 }
 0xc1c   :  { %841 = vperm.xlu1 %1520, %v838_v32  }
 0xc7c   :  { %v847_v33 = vpop.permute.xlu1 %846 }
 0xc7d   :  { %v849_v34 = vmul.f32 %v847_v33, %v1955_v31 }
 0xc7f   :  { %v850_v35 = vsel %vm225_vm10, %v849_v34, 0.0 }
 0xc80   :  { %853 = vperm.xlu0 %1521, %v850_v35  }
 0xc8d   :  { %v373_v37 = vpop.permute.xlu1 %372 }
 0xc8e   :  { %v402_v39 = vmul.f32 %v1763_v20, %v373_v37 }
 0xc90   :  { %v410_v43 = vadd.f32 %v402_v39, %v350_v42 }
 0xc92   :  { %v483_v45 = vpop.permute.xlu1 %482  ;;  %v463_v46 = vadd.f32 %v455_v44, %v410_v43 }
 0xc93   :  { %v508_v47 = vmul.f32 %v1781_v30, %v483_v45 }
 0xc95   :  { %v516_v48 = vadd.f32 %v508_v47, %v463_v46 }
 0xc97   :  { %v524_v50 = vadd.f32 %v516_v48, %v1787_v38 }
 0xc99   :  { %v858_v55 = vadd.f32 %v826_v13, %v524_v50 }
 0xc9b   :  { %v842_v49 = vpop.permute.xlu1 %841 }
 0xc9c   :  { %v844_v53 = vmul.f32 %v1768_v22, %v842_v49 }
 0xcff   :  { %v854_v51 = vpop.permute.xlu0 %853 }
 0xd00   :  { %v856_v54 = vmul.f32 %v1763_v20, %v854_v51 }
 0xd02   :  { %v857_v61 = vadd.f32 %v856_v54, %v844_v53 }
 0xd04   :  { %v859_v62 = vadd.f32 %v858_v55, %v857_v61 }
 0xd06   :  { %v860_v63 = vmul.f32 0.5, %v859_v62 }
 0xd08   :  { %v861_v52 = vsel %vm1790_vm6, %v859_v62, %v860_v63 }
 0xd09   :  { %1562 = vtanh.f32 %v861_v52 }
 0xd13   :  { %v1563_v1 = vpop.eup %1562 }
 0xd14   :  { %v863_v3 = vadd.f32 1.0, %v1563_v1 }
 0xd16   :  { %v864_v4 = vmul.f32 0.5, %v863_v3 }
 0xd18   :  { %v865_v6 = vsel %vm1790_vm6, %v1563_v1, %v864_v4 }
 0xd19   :  { %868 = vrot.lane.b32.xlu1 %v865_v6, %s1652_s7  ;;  %v866_v9 = vmul.f32 %v865_v6, %v1928_v2 }
 0xd8b   :  { %v869_v60 = vpop.permute.xlu1 %868 }
 0xd8c   :  { %v871_v8 = vmul.f32 %v869_v60, %v865_v6 }
 0xd8e   :  { %873 = vrot.lane.b32.xlu1 %v871_v8, %s1653_s21 }
 0xe00   :  { %v874_v10 = vpop.permute.xlu1 %873 }
 0xe01   :  { %v1975_v13 = vadd.f32 %v874_v10, %v866_v9 }
 0xe03   :  { %1564 = vtanh.f32 %v1975_v13 }
 0xe0d   :  { %v1565_v16 = vpop.eup %1564 }
 0xe0e   :  { %879 = vrot.lane.b32.xlu0 %v1565_v16, %s1652_s7 }
 0xe12   :  { %279 = vrot.lane.b32.xlu0 %v216_v19, %s1648_s23 }
 0xe16   :  { %325 = vperm.xlu0 %1521, %v259_v23  }
 0xe1a   :  { %1522 = vset.pattern.permute.xlu0 %v1649_v11 }
 0xe1b   :  { %433 = vperm.xlu0 %1522, %v216_v19  }
 0xe1f   :  { %1525 = vset.pattern.permute.xlu0 %v1650_v12 }
 0xe80   :  { %v880_v2 = vpop.permute.xlu0 %879 }
 0xe81   :  { %v882_v24 = vmul.f32 %v880_v2, %v865_v6 }
 0xe83   :  { %v883_v25 = vpack.c.bf16 %v882_v24, %v882_v24 }
 0xe84   :  { %v280_v35 = vpop.permute.xlu0 %279 }
 0xe85   :  { %885 = vrot.lane.b32.xlu1 %v883_v25, %s1653_s21  ;;  %v299_v37 = vsel %vm226_vm11, 0.0, %v280_v35  ;;  %v217_v35 = vld [vmem:[%s2224_s1 + $0x28] sm:$0xff] }
 0xe86   :  { %vm227_vm12 = vcmp.ne.f32.partialorder %v217_v35, %v217_v35 }
 0xe95   :  { %v326_v47 = vpop.permute.xlu0 %325 }
 0xe96   :  { %v351_v51 = vmul.f32 %v1768_v22, %v326_v47 }
 0xe9a   :  { %v434_v50 = vpop.permute.xlu0 %433 }
 0xe9b   :  { %v456_v54 = vmul.f32 %v1775_v26, %v434_v50 }
 0xef7   :  { %v886_v27 = vpop.permute.xlu1 %885 }
 0xef8   :  { %1442 = vmatmul.mubr.msk.bf16.vlgmr.msra.gmra.mrb[8].mxu0 %vm586_vm8, %v886_v27 }
 0xef9   :  { %1087 = vmatpush1.bf16.msra.mxu0 %v1817_v57  ;;  %1118 = vmatprep.mubr.bf16.mxu0 %v1650_v12 }
 0xefa   :  { %1088 = vmatprep.subr.bf16.mxu0 %v1822_v58 }
 0xefd   :  { %1089 = vmatpush1.bf16.msra.mxu0 %v1830_v59 }
 0xefe   :  { %1473 = vmatprep.subr.bf16.mxu0 %v1647_v5 }
 0xfcb   :  { %v924_v28 = vpop.f32.mrb[8].mxu0 }
 0xfcc   :  { %v926_v29 = vpop.f32.mrb[9].mxu0 }
 0xfcd   :  { %v1994_v32 = vadd.f32 %v1851_v0, %v926_v29  ;;  %v928_v33 = vpop.f32.mrb[10].mxu0 }
 0xfce   :  { %v929_v34 = vpop.f32.mrb[11].mxu0 }
 0xfcf   :  { %v932_v36 = vmul.f32 0.5, %v1994_v32  ;;  %944 = vrot.lane.b32.xlu1 %v1994_v32, %s1648_s23 }
 0xfd1   :  { %1566 = vtanh.f32 %v932_v36  ;;  %v260_v36 = vsel %vm227_vm12, 0.0, %v217_v35 }
 0xfd3   :  { %377 = vperm.xlu1 %1520, %v299_v37  }
 0xfd7   :  { %1523 = vset.pattern.permute.xlu1 %v1651_v14 }
 0xfd8   :  { %486 = vperm.xlu1 %1523, %v216_v19  }
 0xfdb   :  { %v1567_v39 = vpop.eup %1566 }
 0xfdc   :  { %1524 = vset.pattern.permute.xlu1 %v1650_v12  ;;  %v934_v40 = vadd.f32 1.0, %v1567_v39 }
 0xfde   :  { %v2002_v42 = vmul.f32 0.5, %v934_v40 }
 0xfe0   :  { %v936_v43 = vsel %vm226_vm11, %v2002_v42, 0.0 }
 0xfe1   :  { %939 = vperm.xlu1 %1524, %v936_v43  }
0x1041   :  { %v945_v44 = vpop.permute.xlu1 %944 }
0x1042   :  { %v947_v45 = vmul.f32 %v945_v44, %v2002_v42 }
0x1044   :  { %v948_v46 = vsel %vm226_vm11, %v947_v45, 0.0 }
0x1045   :  { %951 = vperm.xlu0 %1525, %v948_v46  }
0x1052   :  { %v378_v48 = vpop.permute.xlu1 %377 }
0x1053   :  { %v403_v49 = vmul.f32 %v1763_v20, %v378_v48 }
0x1055   :  { %v411_v53 = vadd.f32 %v403_v49, %v351_v51 }
0x1057   :  { %v487_v55 = vpop.permute.xlu1 %486  ;;  %v464_v61 = vadd.f32 %v456_v54, %v411_v53 }
0x1058   :  { %v509_v62 = vmul.f32 %v1781_v30, %v487_v55 }
0x105a   :  { %v517_v63 = vadd.f32 %v509_v62, %v464_v61 }
0x105c   :  { %v525_v1 = vadd.f32 %v517_v63, %v1787_v38 }
0x105e   :  { %v956_v60 = vadd.f32 %v924_v28, %v525_v1 }
0x1060   :  { %v940_v52 = vpop.permute.xlu1 %939 }
0x1061   :  { %v942_v4 = vmul.f32 %v1768_v22, %v940_v52 }
0x10c4   :  { %v952_v3 = vpop.permute.xlu0 %951 }
0x10c5   :  { %v954_v6 = vmul.f32 %v1763_v20, %v952_v3 }
0x10c7   :  { %v955_v8 = vadd.f32 %v954_v6, %v942_v4 }
0x10c9   :  { %v957_v9 = vadd.f32 %v956_v60, %v955_v8 }
0x10cb   :  { %v958_v10 = vmul.f32 0.5, %v957_v9 }
0x10cd   :  { %v959_v16 = vsel %vm1790_vm6, %v957_v9, %v958_v10 }
0x10ce   :  { %1568 = vtanh.f32 %v959_v16 }
0x10d8   :  { %v1569_v19 = vpop.eup %1568 }
0x10d9   :  { %v961_v23 = vadd.f32 1.0, %v1569_v19 }
0x10db   :  { %v962_v2 = vmul.f32 0.5, %v961_v23 }
0x10dd   :  { %v963_v24 = vsel %vm1790_vm6, %v1569_v19, %v962_v2 }
0x10de   :  { %966 = vrot.lane.b32.xlu1 %v963_v24, %s1652_s7  ;;  %v964_v28 = vmul.f32 %v963_v24, %v1975_v13 }
0x1150   :  { %v967_v25 = vpop.permute.xlu1 %966 }
0x1151   :  { %v969_v27 = vmul.f32 %v967_v25, %v963_v24 }
0x1153   :  { %971 = vrot.lane.b32.xlu1 %v969_v27, %s1653_s21 }
0x11c5   :  { %v972_v29 = vpop.permute.xlu1 %971 }
0x11c6   :  { %v2022_v33 = vadd.f32 %v972_v29, %v964_v28 }
0x11c8   :  { %1570 = vtanh.f32 %v2022_v33 }
0x11d2   :  { %v1571_v34 = vpop.eup %1570 }
0x11d3   :  { %977 = vrot.lane.b32.xlu0 %v1571_v34, %s1652_s7 }
0x11d7   :  { %281 = vrot.lane.b32.xlu0 %v217_v35, %s1648_s23 }
0x11db   :  { %330 = vperm.xlu0 %1525, %v260_v36  }
0x11df   :  { %1526 = vset.pattern.permute.xlu0 %v1649_v11 }
0x11e0   :  { %437 = vperm.xlu0 %1526, %v217_v35  }
0x11e4   :  { %1529 = vset.pattern.permute.xlu0 %v1650_v12 }
0x1245   :  { %v978_v13 = vpop.permute.xlu0 %977 }
0x1246   :  { %v980_v37 = vmul.f32 %v978_v13, %v963_v24 }
0x1248   :  { %v981_v39 = vpack.c.bf16 %v980_v37, %v980_v37 }
0x1249   :  { %v282_v48 = vpop.permute.xlu0 %281 }
0x124a   :  { %983 = vrot.lane.b32.xlu1 %v981_v39, %s1653_s21 }
0x125a   :  { %v331_v62 = vpop.permute.xlu0 %330 }
0x125b   :  { %v352_v3 = vmul.f32 %v1768_v22, %v331_v62 }
0x125f   :  { %v438_v1 = vpop.permute.xlu0 %437 }
0x1260   :  { %v457_v6 = vmul.f32 %v1775_v26, %v438_v1 }
0x12bc   :  { %v984_v40 = vpop.permute.xlu1 %983 }
0x12bd   :  { %1443 = vmatmul.mubr.msk.bf16.vlgmr.msra.gmra.mrb[12].mxu1 %vm586_vm8, %v984_v40 }
0x12be   :  { %1185 = vmatpush1.bf16.msra.mxu1 %v1817_v57  ;;  %1216 = vmatprep.mubr.bf16.mxu1 %v1650_v12  ;;  %v300_v57 = vsel %vm227_vm12, 0.0, %v282_v48  ;;  %v218_v48 = vld [vmem:[%s2224_s1 + $0x30] sm:$0xff] }
0x12bf   :  { %1186 = vmatprep.subr.bf16.mxu1 %v1822_v58  ;;  %vm228_vm13 = vcmp.ne.f32.partialorder %v218_v48, %v218_v48 }
0x12c2   :  { %1187 = vmatpush1.bf16.msra.mxu1 %v1830_v59 }
0x1390   :  { %v1022_v43 = vpop.f32.mrb[12].mxu1 }
0x1391   :  { %v1024_v44 = vpop.f32.mrb[13].mxu1 }
0x1392   :  { %v2040_v45 = vadd.f32 %v1851_v0, %v1024_v44  ;;  %v1026_v46 = vpop.f32.mrb[14].mxu1 }
0x1393   :  { %v1027_v47 = vpop.f32.mrb[15].mxu1 }
0x1394   :  { %v1030_v49 = vmul.f32 0.5, %v2040_v45  ;;  %1042 = vrot.lane.b32.xlu1 %v2040_v45, %s1648_s23 }
0x1396   :  { %1572 = vtanh.f32 %v1030_v49  ;;  %v261_v49 = vsel %vm228_vm13, 0.0, %v218_v48 }
0x1398   :  { %382 = vperm.xlu1 %1524, %v300_v57  }
0x139c   :  { %1527 = vset.pattern.permute.xlu1 %v1651_v14 }
0x139d   :  { %490 = vperm.xlu1 %1527, %v217_v35  }
0x13a0   :  { %v1573_v59 = vpop.eup %1572 }
0x13a1   :  { %1528 = vset.pattern.permute.xlu1 %v1650_v12  ;;  %v1032_v50 = vadd.f32 1.0, %v1573_v59 }
0x13a3   :  { %v2048_v51 = vmul.f32 0.5, %v1032_v50 }
0x13a5   :  { %v1034_v53 = vsel %vm227_vm12, %v2048_v51, 0.0 }
0x13a6   :  { %1037 = vperm.xlu1 %1528, %v1034_v53  }
0x1406   :  { %v1043_v54 = vpop.permute.xlu1 %1042 }
0x1407   :  { %v1045_v55 = vmul.f32 %v1043_v54, %v2048_v51 }
0x1409   :  { %v1046_v61 = vsel %vm227_vm12, %v1045_v55, 0.0 }
0x140a   :  { %1049 = vperm.xlu0 %1529, %v1046_v61  }
0x1417   :  { %v383_v63 = vpop.permute.xlu1 %382 }
0x1418   :  { %v404_v52 = vmul.f32 %v1763_v20, %v383_v63 }
0x141a   :  { %v412_v4 = vadd.f32 %v404_v52, %v352_v3 }
0x141c   :  { %v491_v60 = vpop.permute.xlu1 %490  ;;  %v465_v8 = vadd.f32 %v457_v6, %v412_v4 }
0x141d   :  { %v510_v9 = vmul.f32 %v1781_v30, %v491_v60 }
0x141f   :  { %v518_v10 = vadd.f32 %v510_v9, %v465_v8 }
0x1421   :  { %v526_v19 = vadd.f32 %v518_v10, %v1787_v38 }
0x1423   :  { %v1054_v25 = vadd.f32 %v1022_v43, %v526_v19 }
0x1425   :  { %v1038_v16 = vpop.permute.xlu1 %1037 }
0x1426   :  { %v1040_v2 = vmul.f32 %v1768_v22, %v1038_v16 }
0x1489   :  { %v1050_v23 = vpop.permute.xlu0 %1049 }
0x148a   :  { %v1052_v24 = vmul.f32 %v1763_v20, %v1050_v23 }
0x148c   :  { %v1053_v27 = vadd.f32 %v1052_v24, %v1040_v2 }
0x148e   :  { %v1055_v28 = vadd.f32 %v1054_v25, %v1053_v27 }
0x1490   :  { %v1056_v29 = vmul.f32 0.5, %v1055_v28 }
0x1492   :  { %v1057_v34 = vsel %vm1790_vm6, %v1055_v28, %v1056_v29 }
0x1493   :  { %1574 = vtanh.f32 %v1057_v34 }
0x149d   :  { %v1575_v35 = vpop.eup %1574 }
0x149e   :  { %v1059_v36 = vadd.f32 1.0, %v1575_v35 }
0x14a0   :  { %v1060_v13 = vmul.f32 0.5, %v1059_v36 }
0x14a2   :  { %v1061_v37 = vsel %vm1790_vm6, %v1575_v35, %v1060_v13 }
0x14a3   :  { %1064 = vrot.lane.b32.xlu1 %v1061_v37, %s1652_s7  ;;  %v1062_v43 = vmul.f32 %v1061_v37, %v2022_v33 }
0x1515   :  { %v1065_v39 = vpop.permute.xlu1 %1064 }
0x1516   :  { %v1067_v40 = vmul.f32 %v1065_v39, %v1061_v37 }
0x1518   :  { %1069 = vrot.lane.b32.xlu1 %v1067_v40, %s1653_s21 }
0x158a   :  { %v1070_v44 = vpop.permute.xlu1 %1069 }
0x158b   :  { %v2068_v46 = vadd.f32 %v1070_v44, %v1062_v43 }
0x158d   :  { %1576 = vtanh.f32 %v2068_v46 }
0x1597   :  { %v1577_v47 = vpop.eup %1576 }
0x1598   :  { %1075 = vrot.lane.b32.xlu0 %v1577_v47, %s1652_s7 }
0x159c   :  { %283 = vrot.lane.b32.xlu0 %v218_v48, %s1648_s23 }
0x15a0   :  { %335 = vperm.xlu0 %1529, %v261_v49  }
0x15a4   :  { %1530 = vset.pattern.permute.xlu0 %v1649_v11 }
0x15a5   :  { %441 = vperm.xlu0 %1530, %v218_v48  }
0x15a9   :  { %1533 = vset.pattern.permute.xlu0 %v1650_v12 }
0x160a   :  { %v1076_v33 = vpop.permute.xlu0 %1075 }
0x160b   :  { %v1078_v57 = vmul.f32 %v1076_v33, %v1061_v37 }
0x160d   :  { %v1079_v59 = vpack.c.bf16 %v1078_v57, %v1078_v57 }
0x160e   :  { %v284_v63 = vpop.permute.xlu0 %283 }
0x160f   :  { %1081 = vrot.lane.b32.xlu1 %v1079_v59, %s1653_s21 }
0x161f   :  { %v336_v8 = vpop.permute.xlu0 %335 }
0x1620   :  { %v353_v19 = vmul.f32 %v1768_v22, %v336_v8 }
0x1624   :  { %v442_v16 = vpop.permute.xlu0 %441 }
0x1625   :  { %v458_v2 = vmul.f32 %v1775_v26, %v442_v16 }
0x1681   :  { %v1082_v50 = vpop.permute.xlu1 %1081 }
0x1682   :  { %1444 = vmatmul.mubr.msk.bf16.vlgmr.msra.gmra.mrb[12].mxu0 %vm586_vm8, %v1082_v50  ;;  %v219_v50 = vld [vmem:[%s2224_s1 + $0x38] sm:$0xff] }
0x1683   :  { %1474 = vmatpush3.bf16.msra.mxu0 %v1812_v56  ;;  %1477 = vmatprep.mubr.msk.bf16.mxu0 %vm1646_vm0, %v1647_v5  ;;  %v301_v56 = vsel %vm228_vm13, 0.0, %v284_v63  ;;  %vm229_vm14 = vcmp.ne.f32.partialorder %v219_v50, %v219_v50  ;;  %vm1356_vm0 = vcmask 15360  }
0x1684   :  { %1475 = vmatprep.subr.bf16.mxu0 %v1647_v5 }
0x1687   :  { %1476 = vmatpush3.bf16.msra.mxu0 %v1822_v58 }
0x1755   :  { %v1120_v53 = vpop.f32.mrb[12].mxu0 }
0x1756   :  { %v1122_v54 = vpop.f32.mrb[13].mxu0 }
0x1757   :  { %v2087_v55 = vadd.f32 %v1851_v0, %v1122_v54  ;;  %v1124_v61 = vpop.f32.mrb[14].mxu0 }
0x1758   :  { %v1125_v62 = vpop.f32.mrb[15].mxu0 }
0x1759   :  { %v1128_v52 = vmul.f32 0.5, %v2087_v55  ;;  %1140 = vrot.lane.b32.xlu1 %v2087_v55, %s1648_s23 }
0x175b   :  { %1578 = vtanh.f32 %v1128_v52 }
0x175d   :  { %387 = vperm.xlu1 %1528, %v301_v56  }
0x1761   :  { %1531 = vset.pattern.permute.xlu1 %v1651_v14 }
0x1762   :  { %494 = vperm.xlu1 %1531, %v218_v48  }
0x1765   :  { %v1579_v5 = vpop.eup %1578 }
0x1766   :  { %1532 = vset.pattern.permute.xlu1 %v1650_v12  ;;  %v1130_v58 = vadd.f32 1.0, %v1579_v5 }
0x1768   :  { %v2095_v1 = vmul.f32 0.5, %v1130_v58 }
0x176a   :  { %v1132_v3 = vsel %vm228_vm13, %v2095_v1, 0.0 }
0x176b   :  { %1135 = vperm.xlu1 %1532, %v1132_v3  }
0x17cb   :  { %v1141_v4 = vpop.permute.xlu1 %1140 }
0x17cc   :  { %v1143_v6 = vmul.f32 %v1141_v4, %v2095_v1 }
0x17ce   :  { %v1144_v60 = vsel %vm228_vm13, %v1143_v6, 0.0 }
0x17cf   :  { %1147 = vperm.xlu0 %1533, %v1144_v60  }
0x17dc   :  { %v388_v9 = vpop.permute.xlu1 %387 }
0x17dd   :  { %v405_v10 = vmul.f32 %v1763_v20, %v388_v9 }
0x17df   :  { %v413_v23 = vadd.f32 %v405_v10, %v353_v19 }
0x17e1   :  { %v495_v24 = vpop.permute.xlu1 %494  ;;  %v466_v25 = vadd.f32 %v458_v2, %v413_v23 }
0x17e2   :  { %v511_v27 = vmul.f32 %v1781_v30, %v495_v24  ;;  %v1593_v24 = vld [vmem:[%s2227_s4] ss:$0 sm:$0xff] }
0x17e4   :  { %v519_v28 = vadd.f32 %v511_v27, %v466_v25 }
0x17e6   :  { %v527_v34 = vadd.f32 %v519_v28, %v1787_v38  ;;  %v1594_v28 = vld [vmem:[%s2228_s5] ss:$0 sm:$0xff] }
0x17e8   :  { %v1152_v37 = vadd.f32 %v1120_v53, %v527_v34  ;;  %v262_v53 = vsel %vm229_vm14, 0.0, %v219_v50 }
0x17ea   :  { %v1136_v29 = vpop.permute.xlu1 %1135 }
0x17eb   :  { %v1138_v36 = vmul.f32 %v1768_v22, %v1136_v29 }
0x184e   :  { %v1148_v35 = vpop.permute.xlu0 %1147 }
0x184f   :  { %v1150_v13 = vmul.f32 %v1763_v20, %v1148_v35 }
0x1851   :  { %v1151_v39 = vadd.f32 %v1150_v13, %v1138_v36  ;;  %v1595_v36 = vld [vmem:[%s2228_s5 + $0x1] ss:$0 sm:$0xff]  ;;  %s1655_s5 = smov 2  }
0x1853   :  { %v1153_v40 = vadd.f32 %v1152_v37, %v1151_v39 }
0x1855   :  { %v1154_v43 = vmul.f32 0.5, %v1153_v40 }
0x1857   :  { %v1155_v26 = vsel %vm1790_vm6, %v1153_v40, %v1154_v43 }
0x1858   :  { %1580 = vtanh.f32 %v1155_v26 }
0x1862   :  { %v1581_v44 = vpop.eup %1580 }
0x1863   :  { %v1157_v47 = vadd.f32 1.0, %v1581_v44 }
0x1865   :  { %v1158_v30 = vmul.f32 0.5, %v1157_v47 }
0x1867   :  { %v1159_v48 = vsel %vm1790_vm6, %v1581_v44, %v1158_v30 }
0x1868   :  { %1162 = vrot.lane.b32.xlu1 %v1159_v48, %s1652_s7  ;;  %v1160_v20 = vmul.f32 %v1159_v48, %v2068_v46 }
0x18da   :  { %v1163_v49 = vpop.permute.xlu1 %1162 }
0x18db   :  { %v1165_v22 = vmul.f32 %v1163_v49, %v1159_v48 }
0x18dd   :  { %1167 = vrot.lane.b32.xlu1 %v1165_v22, %s1653_s21 }
0x194f   :  { %v1168_v33 = vpop.permute.xlu1 %1167 }
0x1950   :  { %v2115_v57 = vadd.f32 %v1168_v33, %v1160_v20 }
0x1952   :  { %1582 = vtanh.f32 %v2115_v57 }
0x195c   :  { %v1583_v59 = vpop.eup %1582 }
0x195d   :  { %1173 = vrot.lane.b32.xlu0 %v1583_v59, %s1652_s7 }
0x1961   :  { %285 = vrot.lane.b32.xlu0 %v219_v50, %s1648_s23 }
0x1965   :  { %340 = vperm.xlu0 %1533, %v262_v53  }
0x1969   :  { %1534 = vset.pattern.permute.xlu0 %v1649_v11 }
0x196a   :  { %445 = vperm.xlu0 %1534, %v219_v50  }
0x196e   :  { %1537 = vset.pattern.permute.xlu0 %v1650_v12 }
0x19cf   :  { %v1174_v46 = vpop.permute.xlu0 %1173 }
0x19d0   :  { %v1176_v54 = vmul.f32 %v1174_v46, %v1159_v48 }
0x19d2   :  { %v1177_v61 = vpack.c.bf16 %v1176_v54, %v1176_v54 }
0x19d3   :  { %v286_v3 = vpop.permute.xlu0 %285 }
0x19d4   :  { %1179 = vrot.lane.b32.xlu1 %v1177_v61, %s1653_s21  ;;  %v302_v4 = vsel %vm229_vm14, 0.0, %v286_v3 }
0x19e4   :  { %v341_v19 = vpop.permute.xlu0 %340 }
0x19e5   :  { %v354_v25 = vmul.f32 %v1593_v24, %v341_v19 }
0x1a46   :  { %v1180_v62 = vpop.permute.xlu1 %1179 }
0x1a47   :  { %1445 = vmatmul.mubr.msk.bf16.vlgmr.msra.gmra.mrb[16].mxu1 %vm586_vm8, %v1180_v62 }
0x1b1a   :  { %v1218_v63 = vpop.f32.mrb[16].mxu1 }
0x1b1b   :  { %v1220_v52 = vpop.f32.mrb[17].mxu1 }
0x1b1c   :  { %v2129_v56 = vadd.f32 %v1851_v0, %v1220_v52  ;;  %v1222_v5 = vpop.f32.mrb[18].mxu1 }
0x1b1d   :  { %v1223_v58 = vpop.f32.mrb[19].mxu1 }
0x1b1e   :  { %v1226_v11 = vmul.f32 0.5, %v2129_v56  ;;  %1238 = vrot.lane.b32.xlu1 %v2129_v56, %s1648_s23 }
0x1b20   :  { %1584 = vtanh.f32 %v1226_v11 }
0x1b22   :  { %392 = vperm.xlu1 %1532, %v302_v4  }
0x1b26   :  { %1535 = vset.pattern.permute.xlu1 %v1651_v14  ;;  %v1592_v14 = vld [vmem:[%s2227_s4 + $0x1] ss:$0 sm:$0xff]  ;;  %s1654_s4 = smov 1  }
0x1b27   :  { %498 = vperm.xlu1 %1535, %v219_v50  }
0x1b2a   :  { %v1585_v6 = vpop.eup %1584 }
0x1b2b   :  { %v1228_v60 = vadd.f32 1.0, %v1585_v6  ;;  %1536 = vset.pattern.permute.xlu1 %v1650_v12  ;;  %v446_v12 = vpop.permute.xlu0 %445 }
0x1b2c   :  { %v459_v29 = vmul.f32 %v1594_v28, %v446_v12 }
0x1b2d   :  { %v2137_v0 = vmul.f32 0.5, %v1228_v60  ;;  %v1389_v60 = vsel %vm1354_vm15, %v1862_v17, %v1900_v7 }
0x1b2f   :  { %v1230_v8 = vsel %vm229_vm14, %v2137_v0, 0.0 }
0x1b30   :  { %1233 = vperm.xlu1 %1536, %v1230_v8  }
0x1b90   :  { %v1239_v9 = vpop.permute.xlu1 %1238 }
0x1b91   :  { %v1241_v10 = vmul.f32 %v1239_v9, %v2137_v0 }
0x1b93   :  { %v1242_v16 = vsel %vm229_vm14, %v1241_v10, 0.0 }
0x1b94   :  { %1245 = vperm.xlu0 %1537, %v1242_v16  }
0x1ba1   :  { %v393_v23 = vpop.permute.xlu1 %392 }
0x1ba2   :  { %v406_v2 = vmul.f32 %v1592_v14, %v393_v23 }
0x1ba4   :  { %v414_v27 = vadd.f32 %v406_v2, %v354_v25 }
0x1ba6   :  { %v499_v34 = vpop.permute.xlu1 %498  ;;  %v467_v35 = vadd.f32 %v459_v29, %v414_v27 }
0x1ba7   :  { %v512_v13 = vmul.f32 %v1595_v36, %v499_v34 }
0x1ba9   :  { %v520_v37 = vadd.f32 %v512_v13, %v467_v35 }
0x1bab   :  { %v528_v40 = vadd.f32 %v520_v37, %v1787_v38 }
0x1bad   :  { %v1250_v47 = vadd.f32 %v1218_v63, %v528_v40 }
0x1baf   :  { %v1234_v39 = vpop.permute.xlu1 %1233 }
0x1bb0   :  { %v1236_v26 = vmul.f32 %v1593_v24, %v1234_v39 }
0x1c13   :  { %v1246_v43 = vpop.permute.xlu0 %1245 }
0x1c14   :  { %v1248_v44 = vmul.f32 %v1592_v14, %v1246_v43 }
0x1c16   :  { %v1249_v30 = vadd.f32 %v1248_v44, %v1236_v26 }
0x1c18   :  { %v1251_v48 = vadd.f32 %v1250_v47, %v1249_v30 }
0x1c1a   :  { %v1252_v49 = vmul.f32 0.5, %v1251_v48 }
0x1c1c   :  { %v1253_v22 = vsel %vm1790_vm6, %v1251_v48, %v1252_v49 }
0x1c1d   :  { %1586 = vtanh.f32 %v1253_v22 }
0x1c27   :  { %v1587_v20 = vpop.eup %1586 }
0x1c28   :  { %v1255_v33 = vadd.f32 1.0, %v1587_v20 }
0x1c2a   :  { %v1256_v59 = vmul.f32 0.5, %v1255_v33 }
0x1c2c   :  { %v1257_v50 = vsel %vm1790_vm6, %v1587_v20, %v1256_v59  ;;  %vm1368_vm6 = vcmask 64512  }
0x1c2d   :  { %1260 = vrot.lane.b32.xlu1 %v1257_v50, %s1652_s7  ;;  %v1258_v46 = vmul.f32 %v1257_v50, %v2115_v57 }
0x1c9f   :  { %v1261_v38 = vpop.permute.xlu1 %1260 }
0x1ca0   :  { %v1263_v53 = vmul.f32 %v1261_v38, %v1257_v50 }
0x1ca2   :  { %1265 = vrot.lane.b32.xlu1 %v1263_v53, %s1653_s21 }
0x1d14   :  { %v1266_v54 = vpop.permute.xlu1 %1265 }
0x1d15   :  { %v1268_v61 = vadd.f32 %v1266_v54, %v1258_v46 }
0x1d17   :  { %1588 = vtanh.f32 %v1268_v61 }
0x1d21   :  { %v1589_v62 = vpop.eup %1588 }
0x1d22   :  { %1271 = vrot.lane.b32.xlu0 %v1589_v62, %s1652_s7  ;;  %s1659_s7 = smov 6  }
0x1d26   :  { %1327 = vrot.lane.b32.xlu0 %v1908_v21, %s1654_s4 }
0x1d2a   :  { %1370 = vrot.lane.b32.xlu0 %v1947_v18, %s1654_s4 }
0x1d2e   :  { %1373 = vrot.lane.b32.xlu0 %v1994_v32, %s1655_s5  ;;  %v1596_v32 = vld [vmem:[%s2232_s9] ss:$0 sm:$0xff]  ;;  %s1661_s9 = smov [#allocation4]  }
0x1d2f   :  { %s1413_s13 = sshll.u32 %s1661_s9, 4  ;;  %s1414_s13 = int_to_ptr.vmem [resolvable:$true] %s1413_s13 }
0x1d30   :  { %s1597_s14 = scalar_lea.vmem %s1414_s13, 128  ;;  %p1602_p1 = scmp.lt.s32.totalorder %s1414_s13, %s1414_s13 }
0x1d31   :  { %p1598_p0 = scmp.ne.s32.totalorder %s1414_s13, %s1597_s14  ;;  %p1603_p2 = scmp.lt.s32.totalorder %s1597_s14, %s1597_s14 }
0x1d32   :  { %1376 = vrot.lane.b32.xlu0 %v2040_v45, %s1656_s12 }
0x1d33   :  { %p1604_p3 = por %p1603_p2, %p1602_p1 }
0x1d35   :  { %p1605_p4 = pnand %p1604_p3, %p1598_p0 }
0x1d36   :  { %1379 = vrot.lane.b32.xlu0 %v2087_v55, %s1657_s0 }
0x1d3a   :  { %1382 = vrot.lane.b32.xlu0 %v2129_v56, %s1658_s8 }
0x1d94   :  { %v1272_v41 = vpop.permute.xlu0 %1271 }
0x1d95   :  { %v1274_v57 = vmul.f32 %v1272_v41, %v1257_v50 }
0x1d97   :  { %v1275_v63 = vpack.c.bf16 %v1274_v57, %v1274_v57 }
0x1d98   :  { %v1328_v5 = vpop.permute.xlu0 %1327 }
0x1d99   :  { %1277 = vrot.lane.b32.xlu1 %v1275_v63, %s1653_s21  ;;  %s1660_s21 = smov 7  }
0x1d9c   :  { %v1371_v58 = vpop.permute.xlu0 %1370 }
0x1d9d   :  { %1331 = vrot.lane.b32.xlu1 %v1955_v31, %s1655_s5  ;;  %v1390_v8 = vsel %vm1356_vm0, %v1389_v60, %v1371_v58 }
0x1da0   :  { %v1374_v3 = vpop.permute.xlu0 %1373 }
0x1da1   :  { %1335 = vrot.lane.b32.xlu1 %v2002_v42, %s1656_s12  ;;  %v1391_v10 = vsel %vm1358_vm1, %v1390_v8, %v1374_v3 }
0x1da4   :  { %v1377_v11 = vpop.permute.xlu0 %1376 }
0x1da5   :  { %1339 = vrot.lane.b32.xlu1 %v2048_v51, %s1657_s0  ;;  %v1392_v16 = vsel %vm1360_vm2, %v1391_v10, %v1377_v11 }
0x1da8   :  { %v1380_v6 = vpop.permute.xlu0 %1379 }
0x1da9   :  { %1343 = vrot.lane.b32.xlu1 %v2095_v1, %s1658_s8  ;;  %v1393_v19 = vsel %vm1362_vm3, %v1392_v16, %v1380_v6 }
0x1dac   :  { %v1383_v9 = vpop.permute.xlu0 %1382 }
0x1dad   :  { %1347 = vrot.lane.b32.xlu1 %v2137_v0, %s1659_s7  ;;  %v1394_v23 = vsel %vm1364_vm4, %v1393_v19, %v1383_v9 }
0x1e0b   :  { %v1278_v21 = vpop.permute.xlu1 %1277 }
0x1e0c   :  { %1478 = vmatmul.mubr.msk.bf16.vlgmr.msra.gmra.mrb[16].mxu0 %vm586_vm8, %v1278_v21 }
0x1e0f   :  { %v1332_v4 = vpop.permute.xlu1 %1331 }
0x1e13   :  { %v1336_v0 = vpop.permute.xlu1 %1335 }
0x1e17   :  { %v1340_v7 = vpop.permute.xlu1 %1339 }
0x1edf   :  { %v1316_v18 = vpop.f32.mrb[16].mxu0 }
0x1ee0   :  { %v1317_v45 = vadd.f32 %v1596_v32, %v1316_v18  ;;  %v1479_v55 = vpop.f32.mrb[17].mxu0 }
0x1ee1   :  { %v1319_v31 = vpop.f32.mrb[18].mxu0 }
0x1ee2   :  { %v1322_v52 = vmul.f32 0.5, %v1317_v45  ;;  %1386 = vrot.lane.b32.xlu0 %v1317_v45, %s1659_s7  ;;  %v1480_v42 = vpop.f32.mrb[19].mxu0 }
0x1ee4   :  { %1590 = vtanh.f32 %v1322_v52 }
0x1eee   :  { %v1591_v51 = vpop.eup %1590 }
0x1eef   :  { %v1324_v1 = vadd.f32 1.0, %v1591_v51 }
0x1ef1   :  { %v1325_v56 = vmul.f32 0.5, %v1324_v1 }
0x1ef3   :  { %1351 = vrot.lane.b32.xlu1 %v1325_v56, %s1660_s21 }
0x1f54   :  { %v1387_v17 = vpop.permute.xlu0 %1386 }
0x1f55   :  { %v1395_v14 = vsel %vm1366_vm5, %v1394_v23, %v1387_v17 }
0x1f56   :  { %1396 = vst.msk [vmem:[#allocation4] sm:$0xff] %vm1368_vm6, %v1395_v14 }
0x1f57   :  { %1608 = shalt.err (!%p1605_p4)
}
0x1f58   :  { %s1609_s16 = scalar_lea.hbm %s2234_s11, 128 }
0x1f59   :  { %p1610_p5 = scmp.ne.s32.totalorder %s2234_s11, %s1609_s16  ;;  %p1613_p6 = scmp.lt.u32.totalorder %s1609_s16, %s2234_s11 }
0x1f5b   :  { %p1615_p7 = pnand %p1613_p6, %p1610_p5 }
0x1f5d   :  { %1618 = shalt.err (!%p1615_p7)
}
0x1f5e   :  { %1416 = dma.vmem_to_hbm [thread:$0]  %s1414_s13, 128, %s2234_s11, [#allocation5]   ;;  %v1344_v2 = vpop.permute.xlu1 %1343  ;;  %v1355_v12 = vsel %vm1354_vm15, %v1858_v15, %v1328_v5 }
0x1f5f   :  { %v1357_v24 = vsel %vm1356_vm0, %v1355_v12, %v1332_v4  ;;  %s1662_s1 = smov [#allocation2]  }
0x1f60   :  { %v1359_v27 = vsel %vm1358_vm1, %v1357_v24, %v1336_v0  ;;  %s1403_s23 = sshll.u32 %s1662_s1, 4  ;;  %s1404_s23 = int_to_ptr.vmem [resolvable:$true] %s1403_s23 }
0x1f61   :  { %v1361_v28 = vsel %vm1360_vm2, %v1359_v27, %v1340_v7  ;;  %s1619_s11 = scalar_lea.vmem %s1404_s23, 128  ;;  %p1624_p9 = scmp.lt.s32.totalorder %s1404_s23, %s1404_s23 }
0x1f62   :  { %v1348_v25 = vpop.permute.xlu1 %1347  ;;  %v1363_v29 = vsel %vm1362_vm3, %v1361_v28, %v1344_v2  ;;  %p1620_p8 = scmp.ne.s32.totalorder %s1404_s23, %s1619_s11  ;;  %p1625_p10 = scmp.lt.s32.totalorder %s1619_s11, %s1619_s11 }
0x1f63   :  { %v1365_v34 = vsel %vm1364_vm4, %v1363_v29, %v1348_v25 }
0x1f64   :  { %p1626_p11 = por %p1625_p10, %p1624_p9 }
0x1f66   :  { %v1352_v35 = vpop.permute.xlu1 %1351  ;;  %p1627_p12 = pnand %p1626_p11, %p1620_p8 }
0x1f67   :  { %v1367_v36 = vsel %vm1366_vm5, %v1365_v34, %v1352_v35 }
0x1f68   :  { %1369 = vst.msk [vmem:[#allocation2] sm:$0xff] %vm1368_vm6, %v1367_v36 }
0x1f69   :  { %1630 = shalt.err (!%p1627_p12)
}
0x1f6a   :  { %s1631_s27 = scalar_lea.hbm %s2233_s10, 128 }
0x1f6b   :  { %p1632_p13 = scmp.ne.s32.totalorder %s2233_s10, %s1631_s27  ;;  %p1635_p0 = scmp.lt.u32.totalorder %s1631_s27, %s2233_s10 }
0x1f6d   :  { %p1637_p1 = pnand %p1635_p0, %p1632_p13 }
0x1f6f   :  { %1640 = shalt.err (!%p1637_p1)
}
0x1f70   :  { %1406 = dma.vmem_to_hbm [thread:$0]  %s1404_s23, 128, %s2233_s10, [#allocation3]  }
0x1f71   :  { %1641 = dma.done.wait [#allocation3], 128  }
0x1f72   :  { %1642 = vsyncadd [#allocation3], 4294967168 }
0x1f73   :  { %1643 = dma.done.wait [#allocation5], 128  }
0x1f74   :  { %1644 = vsyncadd [#allocation5], 4294967168 }
0x1f75   :  { %1423 = vsyncpa [#allocation3], 1 }
0x1f76   :  { %1424 = vsyncpa [#allocation5], 1 }

</bundles_post_ra>
